<compile_context>
chip_gen: v6e
topology: v6e:2x2x1
jax: 0.10.0
libtpu: 0.0.40
codegen_flags: <defaults>
</compile_context>

<pallas_src>
from typing import Union

import jax
import jax.numpy as jnp
from jax import lax
from jax.experimental import pallas as pl
from jax.experimental.pallas import tpu as pltpu


class InsufficientLengthError(Exception):
    pass


_CH = 8  # rows per chunk (one f32 sublane tile)


def _make_reservoir_kernel(tile_len: int, tile_chunks: int, tr: int,
                           transient_with_zero: bool, unroll: int):
    """Kernel closing over static tile length / transient length / flags."""

    def kernel(seq_ref, win_ref, wres_ref, out_ref, h_ref):
        # seq_ref:  (T, d)  VMEM input tile (compute dtype)
        # win_ref:  (d, D)  VMEM, constant block across tiles (compute dtype)
        # wres_ref: (D, D)  VMEM, constant block across tiles (compute dtype)
        # out_ref:  (T, D)  VMEM output tile (f32); also used as the staging
        #                   buffer for the hoisted input projection.
        # h_ref:    (1, D)  VMEM persistent reservoir state (f32, across tiles)
        i = pl.program_id(0)

        @pl.when(i == 0)
        def _():
            h_ref[...] = jnp.zeros_like(h_ref)  # reset_states=True semantics

        # Hoisted input projection for the whole tile: one well-shaped MXU
        # matmul, written directly into the output tile (no proj scratch).
        out_ref[...] = jnp.dot(seq_ref[...], win_ref[...],
                               preferred_element_type=jnp.float32)

        tile_base = i * tile_len          # global row index of this tile
        cdt = wres_ref.dtype              # compute dtype of recurrent matmul

        def chunk_body(c, h):
            row0 = pl.multiple_of(c * _CH, _CH)
            # One aligned (8, D) load of the projection chunk.
            p_chunk = out_ref[pl.ds(row0, _CH), :]
            rows = []
            for j in range(_CH):          # static unroll: 8 serial steps
                p_t = p_chunk[j:j + 1, :]                       # (1, D) f32
                pre = p_t + jnp.dot(h.astype(cdt), wres_ref[...],
                                    preferred_element_type=jnp.float32)
                h = jnp.tanh(pre)                               # (1, D) f32
                rows.append(h)
            block = jnp.concatenate(rows, axis=0)               # (8, D)
            # Single (8, D)-aligned store per 8 steps (unmasked vst path).
            out_ref[pl.ds(row0, _CH), :] = block.astype(out_ref.dtype)
            return h

        h_final = lax.fori_loop(0, tile_chunks, chunk_body, h_ref[...],
                                unroll=unroll)
        h_ref[...] = h_final  # persist state for the next sequence tile

        if transient_with_zero and tr > 0:
            # Off the serial path: only tiles intersecting the transient pay.
            @pl.when(tile_base < tr)
            def _():
                gid = tile_base + lax.broadcasted_iota(
                    jnp.int32, (tile_len, 1), 0)
                out_ref[...] = jnp.where(gid < tr, jnp.float32(0.0),
                                         out_ref[...])

    return kernel


def embed_sequence(sequence: jnp.ndarray,
                   w_in: jnp.ndarray,
                   w_res: jnp.ndarray,
                   transient: Union[float, int],
                   transient_with_zero: bool = True,
                   seq_tile: int = 512,
                   compute_dtype=jnp.float32,
                   unroll: int = 2) -> jnp.ndarray:
    """Pallas equivalent of BaseReservoir.embed_sequence (reset_states=True)."""
    n, d = sequence.shape
    d2, D = w_in.shape
    if d != d2:
        raise ValueError(
            f"provided sequence has input embedding dimension of {d} "
            f"instead of {d2}")
    assert w_res.shape == (D, D)

    if isinstance(transient, float):
        tr = int(transient * n)
    else:
        tr = int(transient)
        if n <= tr:
            raise InsufficientLengthError(
                f"transient of {tr} is too large for sequence with length {n}")

    compute_dtype = jnp.dtype(compute_dtype)
    sequence = sequence.astype(compute_dtype)
    w_in = w_in.astype(compute_dtype)
    w_res = w_res.astype(compute_dtype)

    # Tile length: multiple of 8, no larger than the (8-rounded) sequence.
    n_pad8 = ((n + _CH - 1) // _CH) * _CH
    T = min(((seq_tile + _CH - 1) // _CH) * _CH, n_pad8)
    n_pad = ((n + T - 1) // T) * T
    if n_pad != n:
        # Causal recurrence: zero-padded tail rows never affect the first n rows.
        sequence = jnp.pad(sequence, ((0, n_pad - n), (0, 0)))

    tile_chunks = T // _CH
    unroll = max(1, min(int(unroll), tile_chunks))
    kernel = _make_reservoir_kernel(T, tile_chunks, tr, transient_with_zero,
                                    unroll)

    grid_spec = pltpu.PrefetchScalarGridSpec(
        num_scalar_prefetch=0,
        grid=(n_pad // T,),
        in_specs=[
            pl.BlockSpec((T, d), lambda i: (i, 0)),
            # Constant blocks (weights). On v7x these could additionally be
            # single-buffered via pipeline_mode=pl.Buffered(1) for large D.
            pl.BlockSpec((d, D), lambda i: (0, 0)),
            pl.BlockSpec((D, D), lambda i: (0, 0)),
        ],
        out_specs=pl.BlockSpec((T, D), lambda i: (i, 0)),
        scratch_shapes=[
            pltpu.VMEM((1, D), jnp.float32),   # persistent reservoir state
        ],
    )

    # Explicit scoped-VMEM budget (v5e default is only 16 MiB); sized from the
    # actual (double-buffered) tile footprint, with headroom.
    esize = compute_dtype.itemsize
    vmem_needed = (2 * T * d * esize          # sequence tile (double-buffered)
                   + 2 * d * D * esize        # W_in
                   + 2 * D * D * esize        # W_res
                   + 2 * T * D * 4            # output tile (f32)
                   + 2 * D * 4                # state scratch + slack
                   + (1 << 21))
    vmem_limit = int(min(max(vmem_needed, 32 * 1024 * 1024),
                         128 * 1024 * 1024))

    cost = pl.CostEstimate(
        flops=2 * n_pad * (d * D + D * D),
        transcendentals=n_pad * D,
        bytes_accessed=(n_pad * d + d * D + D * D) * esize + n_pad * D * 4,
    )

    out = pl.pallas_call(
        kernel,
        out_shape=jax.ShapeDtypeStruct((n_pad, D), jnp.float32),
        grid_spec=grid_spec,
        compiler_params=pltpu.CompilerParams(
            dimension_semantics=("arbitrary",),   # sequential: state carried
            vmem_limit_bytes=vmem_limit),
        cost_estimate=cost,
    )(sequence, w_in, w_res)

    return out[:n] if n_pad != n else out


def embed_sequence_ref(sequence, w_in, w_res, tr, transient_with_zero=True):
    """Pure-JAX reference for correctness sanity-check."""
    n, _ = sequence.shape
    D = w_in.shape[1]
    h = jnp.zeros((1, D), jnp.float32)
    outs = []
    for t in range(n):
        u = sequence[t:t + 1, :]
        h = jnp.tanh(u @ w_in + h @ w_res)
        if t < tr and transient_with_zero:
            outs.append(jnp.zeros((1, D), jnp.float32))
        else:
            outs.append(h)
    return jnp.concatenate(outs, axis=0)


if __name__ == "__main__":
    # Small shapes: sequence length n=40 (not a multiple of the tile), input
    # dim d=8, reservoir size D=128; tile length 16 -> 3 grid steps + padding.
    n, d, D = 40, 8, 128
    key = jax.random.PRNGKey(0)
    k_seq, k_win, k_res = jax.random.split(key, 3)

    sequence = jax.random.normal(k_seq, (n, d), dtype=jnp.float32)
    # Deterministic synthetic reservoir parameters (ESN-style scaling).
    w_in = jax.random.uniform(k_win, (d, D), dtype=jnp.float32,
                              minval=-0.5, maxval=0.5)
    w_res = jax.random.normal(k_res, (D, D), dtype=jnp.float32) * (0.9 / jnp.sqrt(D))

    transient = 0.25          # float -> tr = int(0.25 * 40) = 10
    out = embed_sequence(sequence, w_in, w_res, transient,
                         transient_with_zero=True, seq_tile=16)
    out = jax.block_until_ready(out)

    tr = int(0.25 * n)
    ref = embed_sequence_ref(sequence, w_in, w_res, tr, True)
    assert out.shape == (n, D)
    assert bool(jnp.all(out[:tr] == 0.0))
    assert jnp.allclose(out, ref, atol=1e-4, rtol=1e-4)

    # Optional fast path: bf16 MXU matmuls, f32 accumulation / f32 state.
    # Looser tolerance: the recurrence is precision-sensitive.
    out_bf16 = embed_sequence(sequence, w_in, w_res, transient,
                              transient_with_zero=True, seq_tile=16,
                              compute_dtype=jnp.bfloat16)
    out_bf16 = jax.block_until_ready(out_bf16)
    assert out_bf16.shape == (n, D)
    assert bool(jnp.all(out_bf16[:tr] == 0.0))
    assert jnp.allclose(out_bf16, ref, atol=5e-2, rtol=0.0)

    print("KERNEL_OK")
</pallas_src>

<mosaic_0001>
module attributes {stable_mosaic.version = 11 : i64} {
  func.func @kernel(%arg0: i32, %arg1: memref<16x8xf32, #tpu.memory_space<vmem>>, %arg2: memref<8x128xf32, #tpu.memory_space<vmem>>, %arg3: memref<128x128xf32, #tpu.memory_space<vmem>>, %arg4: memref<16x128xf32, #tpu.memory_space<vmem>>, %arg5: memref<1x128xf32, #tpu.memory_space<vmem>>) attributes {dimension_semantics = [#tpu.dimension_semantics<arbitrary>], iteration_bounds = array<i64: 3>, scalar_prefetch = 0 : i64, scratch_operands = 1 : i64, tpu.core_type = #tpu.core_type<tc>, window_params = [{transform_indices = @transform_0, window_bounds = array<i64: 16, 8>}, {pipeline_mode = #tpu.pipeline_mode<synchronous>, transform_indices = @transform_1, window_bounds = array<i64: 8, 128>}, {pipeline_mode = #tpu.pipeline_mode<synchronous>, transform_indices = @transform_2, window_bounds = array<i64: 128, 128>}, {transform_indices = @transform_3, window_bounds = array<i64: 16, 128>}]} {
    %c0_i32 = arith.constant 0 : i32
    %0 = arith.cmpi eq, %arg0, %c0_i32 : i32
    %1 = arith.extui %0 : i1 to i32
    %c0_i32_0 = arith.constant 0 : i32
    %2 = arith.cmpi ne, %1, %c0_i32_0 : i32
    scf.if %2 {
      %cst_65 = arith.constant 0.000000e+00 : f32
      %107 = vector.broadcast %cst_65 : f32 to vector<1x128xf32>
      %c0_66 = arith.constant 0 : index
      %c0_67 = arith.constant 0 : index
      %108 = vector.load %arg5[%c0_66, %c0_67] : memref<1x128xf32, #tpu.memory_space<vmem>>, vector<1x128xf32>
      tpu.vector_store %arg5[%c0_66, %c0_67], %107 {strides = array<i32>} : memref<1x128xf32, #tpu.memory_space<vmem>>, vector<1x128xf32>,
    } else {
    }
    %c0 = arith.constant 0 : index
    %c0_1 = arith.constant 0 : index
    %3 = vector.load %arg1[%c0, %c0_1] : memref<16x8xf32, #tpu.memory_space<vmem>>, vector<16x8xf32>
    %c0_2 = arith.constant 0 : index
    %c0_3 = arith.constant 0 : index
    %4 = vector.load %arg2[%c0_2, %c0_3] : memref<8x128xf32, #tpu.memory_space<vmem>>, vector<8x128xf32>
    %cst = arith.constant dense<0.000000e+00> : vector<16x128xf32>
    %5 = tpu.matmul %3, %4, %cst {dimension_numbers = #tpu.dot_dimension_numbers<[1], [0], [0], [1], [0, 0, 1, 1], [], []>} : vector<16x8xf32>, vector<8x128xf32>, vector<16x128xf32> -> vector<16x128xf32>
    %c0_4 = arith.constant 0 : index
    %c0_5 = arith.constant 0 : index
    %6 = vector.load %arg4[%c0_4, %c0_5] : memref<16x128xf32, #tpu.memory_space<vmem>>, vector<16x128xf32>
    tpu.vector_store %arg4[%c0_4, %c0_5], %5 {strides = array<i32>} : memref<16x128xf32, #tpu.memory_space<vmem>>, vector<16x128xf32>,
    %c16_i32 = arith.constant 16 : i32
    %7 = arith.muli %arg0, %c16_i32 : i32
    %c0_6 = arith.constant 0 : index
    %c0_7 = arith.constant 0 : index
    %8 = vector.load %arg5[%c0_6, %c0_7] : memref<1x128xf32, #tpu.memory_space<vmem>>, vector<1x128xf32>
    %c0_i32_8 = arith.constant 0 : i32
    %c8_i32 = arith.constant 8 : i32
    %9 = arith.muli %c0_i32_8, %c8_i32 : i32
    %10 = tpu.assume_multiple %9, 8 : i32
    %11 = arith.index_cast %10 : i32 to index
    %c0_9 = arith.constant 0 : index
    %12 = vector.load %arg4[%11, %c0_9] : memref<16x128xf32, #tpu.memory_space<vmem>>, vector<8x128xf32>
    %13 = vector.extract_strided_slice %12 {offsets = [0, 0], sizes = [1, 128], strides = [1, 1]} : vector<8x128xf32> to vector<1x128xf32>
    %c0_10 = arith.constant 0 : index
    %c0_11 = arith.constant 0 : index
    %14 = vector.load %arg3[%c0_10, %c0_11] : memref<128x128xf32, #tpu.memory_space<vmem>>, vector<128x128xf32>
    %cst_12 = arith.constant dense<0.000000e+00> : vector<1x128xf32>
    %15 = tpu.matmul %8, %14, %cst_12 {dimension_numbers = #tpu.dot_dimension_numbers<[1], [0], [0], [1], [0, 0, 1, 1], [], []>} : vector<1x128xf32>, vector<128x128xf32>, vector<1x128xf32> -> vector<1x128xf32>
    %16 = arith.addf %13, %15 : vector<1x128xf32>
    %17 = math.tanh %16 : vector<1x128xf32>
    %18 = vector.extract_strided_slice %12 {offsets = [1, 0], sizes = [1, 128], strides = [1, 1]} : vector<8x128xf32> to vector<1x128xf32>
    %c0_13 = arith.constant 0 : index
    %c0_14 = arith.constant 0 : index
    %19 = vector.load %arg3[%c0_13, %c0_14] : memref<128x128xf32, #tpu.memory_space<vmem>>, vector<128x128xf32>
    %cst_15 = arith.constant dense<0.000000e+00> : vector<1x128xf32>
    %20 = tpu.matmul %17, %19, %cst_15 {dimension_numbers = #tpu.dot_dimension_numbers<[1], [0], [0], [1], [0, 0, 1, 1], [], []>} : vector<1x128xf32>, vector<128x128xf32>, vector<1x128xf32> -> vector<1x128xf32>
    %21 = arith.addf %18, %20 : vector<1x128xf32>
    %22 = math.tanh %21 : vector<1x128xf32>
    %23 = vector.extract_strided_slice %12 {offsets = [2, 0], sizes = [1, 128], strides = [1, 1]} : vector<8x128xf32> to vector<1x128xf32>
    %c0_16 = arith.constant 0 : index
    %c0_17 = arith.constant 0 : index
    %24 = vector.load %arg3[%c0_16, %c0_17] : memref<128x128xf32, #tpu.memory_space<vmem>>, vector<128x128xf32>
    %cst_18 = arith.constant dense<0.000000e+00> : vector<1x128xf32>
    %25 = tpu.matmul %22, %24, %cst_18 {dimension_numbers = #tpu.dot_dimension_numbers<[1], [0], [0], [1], [0, 0, 1, 1], [], []>} : vector<1x128xf32>, vector<128x128xf32>, vector<1x128xf32> -> vector<1x128xf32>
    %26 = arith.addf %23, %25 : vector<1x128xf32>
    %27 = math.tanh %26 : vector<1x128xf32>
    %28 = vector.extract_strided_slice %12 {offsets = [3, 0], sizes = [1, 128], strides = [1, 1]} : vector<8x128xf32> to vector<1x128xf32>
    %c0_19 = arith.constant 0 : index
    %c0_20 = arith.constant 0 : index
    %29 = vector.load %arg3[%c0_19, %c0_20] : memref<128x128xf32, #tpu.memory_space<vmem>>, vector<128x128xf32>
    %cst_21 = arith.constant dense<0.000000e+00> : vector<1x128xf32>
    %30 = tpu.matmul %27, %29, %cst_21 {dimension_numbers = #tpu.dot_dimension_numbers<[1], [0], [0], [1], [0, 0, 1, 1], [], []>} : vector<1x128xf32>, vector<128x128xf32>, vector<1x128xf32> -> vector<1x128xf32>
    %31 = arith.addf %28, %30 : vector<1x128xf32>
    %32 = math.tanh %31 : vector<1x128xf32>
    %33 = vector.extract_strided_slice %12 {offsets = [4, 0], sizes = [1, 128], strides = [1, 1]} : vector<8x128xf32> to vector<1x128xf32>
    %c0_22 = arith.constant 0 : index
    %c0_23 = arith.constant 0 : index
    %34 = vector.load %arg3[%c0_22, %c0_23] : memref<128x128xf32, #tpu.memory_space<vmem>>, vector<128x128xf32>
    %cst_24 = arith.constant dense<0.000000e+00> : vector<1x128xf32>
    %35 = tpu.matmul %32, %34, %cst_24 {dimension_numbers = #tpu.dot_dimension_numbers<[1], [0], [0], [1], [0, 0, 1, 1], [], []>} : vector<1x128xf32>, vector<128x128xf32>, vector<1x128xf32> -> vector<1x128xf32>
    %36 = arith.addf %33, %35 : vector<1x128xf32>
    %37 = math.tanh %36 : vector<1x128xf32>
    %38 = vector.extract_strided_slice %12 {offsets = [5, 0], sizes = [1, 128], strides = [1, 1]} : vector<8x128xf32> to vector<1x128xf32>
    %c0_25 = arith.constant 0 : index
    %c0_26 = arith.constant 0 : index
    %39 = vector.load %arg3[%c0_25, %c0_26] : memref<128x128xf32, #tpu.memory_space<vmem>>, vector<128x128xf32>
    %cst_27 = arith.constant dense<0.000000e+00> : vector<1x128xf32>
    %40 = tpu.matmul %37, %39, %cst_27 {dimension_numbers = #tpu.dot_dimension_numbers<[1], [0], [0], [1], [0, 0, 1, 1], [], []>} : vector<1x128xf32>, vector<128x128xf32>, vector<1x128xf32> -> vector<1x128xf32>
    %41 = arith.addf %38, %40 : vector<1x128xf32>
    %42 = math.tanh %41 : vector<1x128xf32>
    %43 = vector.extract_strided_slice %12 {offsets = [6, 0], sizes = [1, 128], strides = [1, 1]} : vector<8x128xf32> to vector<1x128xf32>
    %c0_28 = arith.constant 0 : index
    %c0_29 = arith.constant 0 : index
    %44 = vector.load %arg3[%c0_28, %c0_29] : memref<128x128xf32, #tpu.memory_space<vmem>>, vector<128x128xf32>
    %cst_30 = arith.constant dense<0.000000e+00> : vector<1x128xf32>
    %45 = tpu.matmul %42, %44, %cst_30 {dimension_numbers = #tpu.dot_dimension_numbers<[1], [0], [0], [1], [0, 0, 1, 1], [], []>} : vector<1x128xf32>, vector<128x128xf32>, vector<1x128xf32> -> vector<1x128xf32>
    %46 = arith.addf %43, %45 : vector<1x128xf32>
    %47 = math.tanh %46 : vector<1x128xf32>
    %48 = vector.extract_strided_slice %12 {offsets = [7, 0], sizes = [1, 128], strides = [1, 1]} : vector<8x128xf32> to vector<1x128xf32>
    %c0_31 = arith.constant 0 : index
    %c0_32 = arith.constant 0 : index
    %49 = vector.load %arg3[%c0_31, %c0_32] : memref<128x128xf32, #tpu.memory_space<vmem>>, vector<128x128xf32>
    %cst_33 = arith.constant dense<0.000000e+00> : vector<1x128xf32>
    %50 = tpu.matmul %47, %49, %cst_33 {dimension_numbers = #tpu.dot_dimension_numbers<[1], [0], [0], [1], [0, 0, 1, 1], [], []>} : vector<1x128xf32>, vector<128x128xf32>, vector<1x128xf32> -> vector<1x128xf32>
    %51 = arith.addf %48, %50 : vector<1x128xf32>
    %52 = math.tanh %51 : vector<1x128xf32>
    %53 = tpu.concatenate %17, %22, %27, %32, %37, %42, %47, %52 in 0 : vector<1x128xf32>, vector<1x128xf32>, vector<1x128xf32>, vector<1x128xf32>, vector<1x128xf32>, vector<1x128xf32>, vector<1x128xf32>, vector<1x128xf32> -> vector<8x128xf32>
    %54 = arith.index_cast %10 : i32 to index
    %c0_34 = arith.constant 0 : index
    %55 = vector.load %arg4[%54, %c0_34] : memref<16x128xf32, #tpu.memory_space<vmem>>, vector<8x128xf32>
    tpu.vector_store %arg4[%54, %c0_34], %53 {strides = array<i32>} : memref<16x128xf32, #tpu.memory_space<vmem>>, vector<8x128xf32>,
    %c1_i32 = arith.constant 1 : i32
    %c8_i32_35 = arith.constant 8 : i32
    %56 = arith.muli %c1_i32, %c8_i32_35 : i32
    %57 = tpu.assume_multiple %56, 8 : i32
    %58 = arith.index_cast %57 : i32 to index
    %c0_36 = arith.constant 0 : index
    %59 = vector.load %arg4[%58, %c0_36] : memref<16x128xf32, #tpu.memory_space<vmem>>, vector<8x128xf32>
    %60 = vector.extract_strided_slice %59 {offsets = [0, 0], sizes = [1, 128], strides = [1, 1]} : vector<8x128xf32> to vector<1x128xf32>
    %c0_37 = arith.constant 0 : index
    %c0_38 = arith.constant 0 : index
    %61 = vector.load %arg3[%c0_37, %c0_38] : memref<128x128xf32, #tpu.memory_space<vmem>>, vector<128x128xf32>
    %cst_39 = arith.constant dense<0.000000e+00> : vector<1x128xf32>
    %62 = tpu.matmul %52, %61, %cst_39 {dimension_numbers = #tpu.dot_dimension_numbers<[1], [0], [0], [1], [0, 0, 1, 1], [], []>} : vector<1x128xf32>, vector<128x128xf32>, vector<1x128xf32> -> vector<1x128xf32>
    %63 = arith.addf %60, %62 : vector<1x128xf32>
    %64 = math.tanh %63 : vector<1x128xf32>
    %65 = vector.extract_strided_slice %59 {offsets = [1, 0], sizes = [1, 128], strides = [1, 1]} : vector<8x128xf32> to vector<1x128xf32>
    %c0_40 = arith.constant 0 : index
    %c0_41 = arith.constant 0 : index
    %66 = vector.load %arg3[%c0_40, %c0_41] : memref<128x128xf32, #tpu.memory_space<vmem>>, vector<128x128xf32>
    %cst_42 = arith.constant dense<0.000000e+00> : vector<1x128xf32>
    %67 = tpu.matmul %64, %66, %cst_42 {dimension_numbers = #tpu.dot_dimension_numbers<[1], [0], [0], [1], [0, 0, 1, 1], [], []>} : vector<1x128xf32>, vector<128x128xf32>, vector<1x128xf32> -> vector<1x128xf32>
    %68 = arith.addf %65, %67 : vector<1x128xf32>
    %69 = math.tanh %68 : vector<1x128xf32>
    %70 = vector.extract_strided_slice %59 {offsets = [2, 0], sizes = [1, 128], strides = [1, 1]} : vector<8x128xf32> to vector<1x128xf32>
    %c0_43 = arith.constant 0 : index
    %c0_44 = arith.constant 0 : index
    %71 = vector.load %arg3[%c0_43, %c0_44] : memref<128x128xf32, #tpu.memory_space<vmem>>, vector<128x128xf32>
    %cst_45 = arith.constant dense<0.000000e+00> : vector<1x128xf32>
    %72 = tpu.matmul %69, %71, %cst_45 {dimension_numbers = #tpu.dot_dimension_numbers<[1], [0], [0], [1], [0, 0, 1, 1], [], []>} : vector<1x128xf32>, vector<128x128xf32>, vector<1x128xf32> -> vector<1x128xf32>
    %73 = arith.addf %70, %72 : vector<1x128xf32>
    %74 = math.tanh %73 : vector<1x128xf32>
    %75 = vector.extract_strided_slice %59 {offsets = [3, 0], sizes = [1, 128], strides = [1, 1]} : vector<8x128xf32> to vector<1x128xf32>
    %c0_46 = arith.constant 0 : index
    %c0_47 = arith.constant 0 : index
    %76 = vector.load %arg3[%c0_46, %c0_47] : memref<128x128xf32, #tpu.memory_space<vmem>>, vector<128x128xf32>
    %cst_48 = arith.constant dense<0.000000e+00> : vector<1x128xf32>
    %77 = tpu.matmul %74, %76, %cst_48 {dimension_numbers = #tpu.dot_dimension_numbers<[1], [0], [0], [1], [0, 0, 1, 1], [], []>} : vector<1x128xf32>, vector<128x128xf32>, vector<1x128xf32> -> vector<1x128xf32>
    %78 = arith.addf %75, %77 : vector<1x128xf32>
    %79 = math.tanh %78 : vector<1x128xf32>
    %80 = vector.extract_strided_slice %59 {offsets = [4, 0], sizes = [1, 128], strides = [1, 1]} : vector<8x128xf32> to vector<1x128xf32>
    %c0_49 = arith.constant 0 : index
    %c0_50 = arith.constant 0 : index
    %81 = vector.load %arg3[%c0_49, %c0_50] : memref<128x128xf32, #tpu.memory_space<vmem>>, vector<128x128xf32>
    %cst_51 = arith.constant dense<0.000000e+00> : vector<1x128xf32>
    %82 = tpu.matmul %79, %81, %cst_51 {dimension_numbers = #tpu.dot_dimension_numbers<[1], [0], [0], [1], [0, 0, 1, 1], [], []>} : vector<1x128xf32>, vector<128x128xf32>, vector<1x128xf32> -> vector<1x128xf32>
    %83 = arith.addf %80, %82 : vector<1x128xf32>
    %84 = math.tanh %83 : vector<1x128xf32>
    %85 = vector.extract_strided_slice %59 {offsets = [5, 0], sizes = [1, 128], strides = [1, 1]} : vector<8x128xf32> to vector<1x128xf32>
    %c0_52 = arith.constant 0 : index
    %c0_53 = arith.constant 0 : index
    %86 = vector.load %arg3[%c0_52, %c0_53] : memref<128x128xf32, #tpu.memory_space<vmem>>, vector<128x128xf32>
    %cst_54 = arith.constant dense<0.000000e+00> : vector<1x128xf32>
    %87 = tpu.matmul %84, %86, %cst_54 {dimension_numbers = #tpu.dot_dimension_numbers<[1], [0], [0], [1], [0, 0, 1, 1], [], []>} : vector<1x128xf32>, vector<128x128xf32>, vector<1x128xf32> -> vector<1x128xf32>
    %88 = arith.addf %85, %87 : vector<1x128xf32>
    %89 = math.tanh %88 : vector<1x128xf32>
    %90 = vector.extract_strided_slice %59 {offsets = [6, 0], sizes = [1, 128], strides = [1, 1]} : vector<8x128xf32> to vector<1x128xf32>
    %c0_55 = arith.constant 0 : index
    %c0_56 = arith.constant 0 : index
    %91 = vector.load %arg3[%c0_55, %c0_56] : memref<128x128xf32, #tpu.memory_space<vmem>>, vector<128x128xf32>
    %cst_57 = arith.constant dense<0.000000e+00> : vector<1x128xf32>
    %92 = tpu.matmul %89, %91, %cst_57 {dimension_numbers = #tpu.dot_dimension_numbers<[1], [0], [0], [1], [0, 0, 1, 1], [], []>} : vector<1x128xf32>, vector<128x128xf32>, vector<1x128xf32> -> vector<1x128xf32>
    %93 = arith.addf %90, %92 : vector<1x128xf32>
    %94 = math.tanh %93 : vector<1x128xf32>
    %95 = vector.extract_strided_slice %59 {offsets = [7, 0], sizes = [1, 128], strides = [1, 1]} : vector<8x128xf32> to vector<1x128xf32>
    %c0_58 = arith.constant 0 : index
    %c0_59 = arith.constant 0 : index
    %96 = vector.load %arg3[%c0_58, %c0_59] : memref<128x128xf32, #tpu.memory_space<vmem>>, vector<128x128xf32>
    %cst_60 = arith.constant dense<0.000000e+00> : vector<1x128xf32>
    %97 = tpu.matmul %94, %96, %cst_60 {dimension_numbers = #tpu.dot_dimension_numbers<[1], [0], [0], [1], [0, 0, 1, 1], [], []>} : vector<1x128xf32>, vector<128x128xf32>, vector<1x128xf32> -> vector<1x128xf32>
    %98 = arith.addf %95, %97 : vector<1x128xf32>
    %99 = math.tanh %98 : vector<1x128xf32>
    %100 = tpu.concatenate %64, %69, %74, %79, %84, %89, %94, %99 in 0 : vector<1x128xf32>, vector<1x128xf32>, vector<1x128xf32>, vector<1x128xf32>, vector<1x128xf32>, vector<1x128xf32>, vector<1x128xf32>, vector<1x128xf32> -> vector<8x128xf32>
    %101 = arith.index_cast %57 : i32 to index
    %c0_61 = arith.constant 0 : index
    %102 = vector.load %arg4[%101, %c0_61] : memref<16x128xf32, #tpu.memory_space<vmem>>, vector<8x128xf32>
    tpu.vector_store %arg4[%101, %c0_61], %100 {strides = array<i32>} : memref<16x128xf32, #tpu.memory_space<vmem>>, vector<8x128xf32>,
    %c2_i32 = arith.constant 2 : i32
    %c0_62 = arith.constant 0 : index
    %c0_63 = arith.constant 0 : index
    %103 = vector.load %arg5[%c0_62, %c0_63] : memref<1x128xf32, #tpu.memory_space<vmem>>, vector<1x128xf32>
    tpu.vector_store %arg5[%c0_62, %c0_63], %99 {strides = array<i32>} : memref<1x128xf32, #tpu.memory_space<vmem>>, vector<1x128xf32>,
    %c10_i32 = arith.constant 10 : i32
    %104 = arith.cmpi slt, %7, %c10_i32 : i32
    %105 = arith.extui %104 : i1 to i32
    %c0_i32_64 = arith.constant 0 : i32
    %106 = arith.cmpi ne, %105, %c0_i32_64 : i32
    scf.if %106 {
      %107 = tpu.iota {dimensions = array<i32: 0>} : vector<16x1xi32>
      %108 = vector.broadcast %7 : i32 to vector<16x1xi32>
      %109 = arith.addi %108, %107 : vector<16x1xi32>
      %c10_i32_65 = arith.constant 10 : i32
      %110 = vector.broadcast %c10_i32_65 : i32 to vector<16x1xi32>
      %111 = arith.cmpi slt, %109, %110 : vector<16x1xi32>
      %c0_66 = arith.constant 0 : index
      %c0_67 = arith.constant 0 : index
      %112 = vector.load %arg4[%c0_66, %c0_67] : memref<16x128xf32, #tpu.memory_space<vmem>>, vector<16x128xf32>
      %cst_68 = arith.constant 0.000000e+00 : f32
      %113 = vector.shape_cast %111 : vector<16x1xi1> to vector<16x1xi1>
      %114 = vector.broadcast %113 : vector<16x1xi1> to vector<16x128xi1>
      %115 = vector.broadcast %cst_68 : f32 to vector<16x128xf32>
      %116 = arith.select %114, %115, %112 : vector<16x128xi1>, vector<16x128xf32>
      %c0_69 = arith.constant 0 : index
      %c0_70 = arith.constant 0 : index
      %117 = vector.load %arg4[%c0_69, %c0_70] : memref<16x128xf32, #tpu.memory_space<vmem>>, vector<16x128xf32>
      tpu.vector_store %arg4[%c0_69, %c0_70], %116 {strides = array<i32>} : memref<16x128xf32, #tpu.memory_space<vmem>>, vector<16x128xf32>,
    } else {
    }
    return
  }
  func.func @transform_0(%arg0: i32) -> (i32, i32) {
    %c0_i32 = arith.constant 0 : i32
    %c0_i32_0 = arith.constant 0 : i32
    return %arg0, %c0_i32 : i32, i32
  }
  func.func @transform_1(%arg0: i32) -> (i32, i32) {
    %c0_i32 = arith.constant 0 : i32
    %c0_i32_0 = arith.constant 0 : i32
    %c0_i32_1 = arith.constant 0 : i32
    return %c0_i32, %c0_i32_0 : i32, i32
  }
  func.func @transform_2(%arg0: i32) -> (i32, i32) {
    %c0_i32 = arith.constant 0 : i32
    %c0_i32_0 = arith.constant 0 : i32
    %c0_i32_1 = arith.constant 0 : i32
    return %c0_i32, %c0_i32_0 : i32, i32
  }
  func.func @transform_3(%arg0: i32) -> (i32, i32) {
    %c0_i32 = arith.constant 0 : i32
    %c0_i32_0 = arith.constant 0 : i32
    return %arg0, %c0_i32 : i32, i32
  }
}

</mosaic_0001>

<bundles_post_ra>
// kernel: tpu_custom_call.1
= control target key start
LH: loop header
LB: loop body
LE: loop exit
PB: predicated region body
PF: predicated region fallthrough
CT: control target
= control target key end

     0   :  { %8 = vsyncpa [#allocation4], 0  ;;  %s3564_s0 = inlined_call_operand.vmem [shape: f32[48,8], index: 0, kind: input, shape index: {}]   ;;  %s3565_s1 = inlined_call_operand.vmem [shape: f32[8,128], index: 1, kind: input, shape index: {}]   ;;  %s3566_s2 = inlined_call_operand.hbm [shape: f32[128,128], index: 2, kind: input, shape index: {}]   ;;  %s3567_s3 = inlined_call_operand.hbm [shape: f32[48,128], index: 3, kind: output, shape index: {}]  }
   0x1   :  { %9 = vsyncpa [#allocation5], 0 }
   0x2   :  { %11 = vsyncpa [#allocation5 + $0x1], 0  ;;  %s2771_s12 = smov 0   ;;  %s2773_s13 = smov 0  }
   0x3   :  { %s2775_s14 = smov 0   ;;  %s2777_s15 = smov 0  }
   0x4 LB: > { %s2792_s16 = sadd.s32 4294967295, %s2740_s15   ;;  %s1683_s17 = sadd.s32 4294967294, %s2740_s15   ;;  %s2740_s15 = sphi %s2777_s15, %s3576_s15   ;;  %s2736_s14 = sphi %s2775_s14, %s3575_s14   ;;  %s2732_s13 = sphi %s2773_s13, %s3574_s13   ;;  %s2728_s12 = sphi %s2771_s12, %s3573_s12  }
   0x5   : > { %s2796_s18 = sadd.s32 1, %s2740_s15   ;;  %s92_s19 = sadd.s32 1, %s2736_s14 }
   0x6   : > { %s89_s20 = ssub.s32 %s2740_s15, %s2796_s18  ;;  %p102_p0 = scmp.ne.s32.totalorder %s2736_s14, %s2732_s13 }
   0x7   : > { %p90_p1 = scmp.eq.s32.totalorder %s89_s20, 0  ;;  %p103_p2 = scmp.eq.s32.totalorder %s2792_s16, 2 }
   0x8   : > { %p108_p3 = scmp.ne.s32.totalorder %s2732_s13, %s2728_s12  ;;  %p109_p4 = scmp.eq.s32.totalorder %s1683_s17, 2 }
   0x9   : > { %s2807_s21 = scalar_select %p90_p1, %s2736_s14, %s92_s19  }
   0xa   : > { %p2809_p5 = por %p103_p2, %p102_p0  ;;  %p2813_p6 = por %p109_p4, %p108_p3 }
   0xb   : > { %p1684_p7 = scmp.ge.s32.totalorder %s2740_s15, 1  ;;  %p116_p8 = scmp.lt.s32.totalorder %s2740_s15, 4 }
   0xc   : > { %s3569_s23 = scalar_select %p2813_p6, 1, 0 }
   0xd   : > { %p2559_p10 = scmp.eq.s32.totalorder %s2792_s16, 0  ;;  %p2821_p11 = pnand %p1684_p7, %p116_p8 }
   0xe   : > { %s2742_s25 = smov [#allocation3]  }
   0xf   : > { %s131_s26 = sshll.u32 %s2742_s25, 4  ;;  %p2551_p12 = pneg %p2821_p11  ;;  %s132_s26 = int_to_ptr.vmem [resolvable:$true] %s131_s26 }
  0x10   : > { %s2661_s27 = scalar_lea.vmem %s132_s26, 2048  ;;  %p2669_p4 = scmp.lt.s32.totalorder %s132_s26, %s132_s26 }
  0x11   : > { %p2552_p13 = pnand %p2559_p10, %p2551_p12  ;;  %p2662_p1 = scmp.ne.s32.totalorder %s132_s26, %s2661_s27 }
  0x12   : > { %p2670_p9 = scmp.lt.s32.totalorder %s2661_s27, %s2661_s27 }
  0x13   : > { %p2652_p0 = pneg %p2552_p13 }
  0x14   : > { %p2671_p6 = por %p2670_p9, %p2669_p4 }
  0x15   : > { %p2664_p2 = pnand %p2662_p1, %p2652_p0 }
  0x17   : > { %p2665_p3 = pneg %p2664_p2 }
  0x19   : > { %p2672_p7 = pnand %p2671_p6, %p2665_p3 }
  0x1b   : > { %2675 = shalt.err (!%p2672_p7)
}
  0x1c   : > { %s2743_s28 = smov 128   ;;  %s2744_s29 = smov 8  }
  0x1d   : > { %2554 = dma.hbm_to_vmem [thread:$0]  (!%p2552_p13), %s3566_s2, 2048, %s132_s26, [#allocation4], %s2743_s28, %s2743_s28, %s2744_s29  }
  0x1e   : > { %156 = sbr.rel (%p2821_p11) target bundleno = 3515 (0xdbb), region = 32 }
  0x23   : > { %2719 = dma.done.wait (%p2559_p10), [#allocation4], 2048  }
  0x24   : > { %2721 = vsyncadd (%p2559_p10), [#allocation4], 4294965248  ;;  %s177_s5 = sand.u32 1, %s2732_s13   ;;  %s1690_s6 = sshll.u32 %s2792_s16, 1 }
  0x25   : > { %s1689_s7 = sshll.u32 %s177_s5, 4  ;;  %p181_p6 = scmp.lt.s32.totalorder %s1690_s6, 5 }
  0x26   : > { %s2845_s17 = scalar_lea.vmem [#allocation6], %s1689_s7  ;;  %p3571_p8 = scmp.ne.s32.totalorder %s2792_s16, 0 }
  0x27   : > { %s3578_s6 = smov (!%p181_p6, %s1690_s6), 5 }
  0x28   : > { %s1691_s8 = sshll.u32 %s3578_s6, 3  ;;  %190 = sbr.rel (%p3571_p8) target bundleno = 47 (0x2f), region = 40 }
  0x29   : > { %s184_s11 = scalar_lea.vmem %s3564_s0, %s1691_s8 }
  0x2d   : > { %v2745_v0 = vmov 0.0  }
  0x2e   : > { %191 = vst [vmem:[#allocation2] sm:$0x1] %v2745_v0 }
  0x2f PF: > { %s1695_s19 = sshll.u32 %s2792_s16, 4  ;;  %v2850_v1 = vld [vmem:[#allocation3 + $0x78] sm:$0xff]  ;;  %v2746_v2 = vmov 0.0   ;;  %v2853_v3 = vld [vmem:[#allocation3 + $0x70] sm:$0xff]  ;;  %vm2747_vm0 = vmmov 0   ;;  %v2859_v4 = vld [vmem:[#allocation3 + $0x68] sm:$0xff] }
  0x30   : > { %1985 = vmatprep.subr.mxu1 %v2746_v2  ;;  %2017 = vmatprep.mubr.msk.f32.mxu1 %vm2747_vm0, %v2746_v2  ;;  %v194_v5 = vld [vmem:[%s3565_s1] sm:$0xff]  ;;  %vm195_vm1 = vcmask 64512   ;;  %v193_v7 = vld [vmem:[%s184_s11 + $0x8] sm:$0xff]  ;;  %v2875_v10 = vld [vmem:[#allocation3 + $0x50] sm:$0xff]  ;;  %vm913_vm2 = vcmask 1040384   ;;  %vm915_vm3 = vcmask 1041408  }
  0x31   : > { %1986 = vmatpush3.msra.mxu1 %v2850_v1  ;;  %v192_v6 = vld [vmem:[%s184_s11] sm:$0xff]  ;;  %1980 = vmatprep.subr.mxu0 %v194_v5  ;;  %v2881_v11 = vld [vmem:[#allocation3 + $0x48] sm:$0xff]  ;;  %v2899_v14 = vld [vmem:[#allocation3 + $0x30] sm:$0xff]  ;;  %vm917_vm4 = vcmask 1042432   ;;  %vm919_vm5 = vcmask 1043456   ;;  %vm921_vm6 = vcmask 1044480  }
  0x32   : > { %1987 = vmatprep.subr.mxu1 %v2746_v2  ;;  %v2866_v8 = vld [vmem:[#allocation3 + $0x60] sm:$0xff]  ;;  %1981 = vmatpush3.msra.mxu0 %v194_v5  ;;  %v2870_v9 = vld [vmem:[#allocation3 + $0x58] sm:$0xff]  ;;  %v2905_v15 = vld [vmem:[#allocation3 + $0x28] sm:$0xff]  ;;  %vm923_vm7 = vcmask 1045504   ;;  %vm925_vm8 = vcmask 1046528   ;;  %p1698_p9 = scmp.ge.s32.totalorder %s1695_s19, 10 }
  0x33   : > { %1988 = vmatpush3.msra.mxu1 %v2853_v3  ;;  %1982 = vmatprep.mubr.msk.f32.mxu0 %vm195_vm1, %v192_v6  ;;  %v2887_v12 = vld [vmem:[#allocation3 + $0x40] sm:$0xff]  ;;  %v2893_v13 = vld [vmem:[#allocation3 + $0x38] sm:$0xff]  ;;  %v2923_v18 = vld [vmem:[#allocation3 + $0x10] sm:$0xff] }
  0x34   : > { %1989 = vmatprep.subr.mxu1 %v2746_v2  ;;  %1983 = vmatmul.mubr.msk.f32.vlgmr.msra.gmra.mxu0 %vm195_vm1, %v193_v7  ;;  %v2911_v16 = vld [vmem:[#allocation3 + $0x20] sm:$0xff]  ;;  %v2917_v17 = vld [vmem:[#allocation3 + $0x18] sm:$0xff]  ;;  %v2929_v19 = vld [vmem:[#allocation3 + $0x8] sm:$0xff] }
  0x35   : > { %1990 = vmatpush3.msra.mxu1 %v2859_v4  ;;  %2020 = vmatprep.subr.mxu0 %v2746_v2  ;;  %v2935_v20 = vld [vmem:[#allocation3] sm:$0xff]  ;;  %v280_v21 = vld [vmem:[#allocation2] sm:$0x1] }
  0x36   : > { %1991 = vmatprep.subr.mxu1 %v2746_v2  ;;  %2021 = vmatpush3.msra.mxu0 %v2850_v1 }
  0x37   : > { %1992 = vmatpush3.msra.mxu1 %v2866_v8  ;;  %2022 = vmatprep.subr.mxu0 %v2746_v2 }
  0x38   : > { %1993 = vmatprep.subr.mxu1 %v2746_v2  ;;  %2023 = vmatpush3.msra.mxu0 %v2853_v3 }
  0x39   : > { %1994 = vmatpush3.msra.mxu1 %v2870_v9  ;;  %2024 = vmatprep.subr.mxu0 %v2746_v2 }
  0x3a   : > { %1995 = vmatprep.subr.mxu1 %v2746_v2  ;;  %2025 = vmatpush3.msra.mxu0 %v2859_v4 }
  0x3b   : > { %1996 = vmatpush3.msra.mxu1 %v2875_v10  ;;  %2026 = vmatprep.subr.mxu0 %v2746_v2 }
  0x3c   : > { %1997 = vmatprep.subr.mxu1 %v2746_v2  ;;  %2027 = vmatpush3.msra.mxu0 %v2866_v8 }
  0x3d   : > { %1998 = vmatpush3.msra.mxu1 %v2881_v11  ;;  %2028 = vmatprep.subr.mxu0 %v2746_v2 }
  0x3e   : > { %1999 = vmatprep.subr.mxu1 %v2746_v2  ;;  %2029 = vmatpush3.msra.mxu0 %v2870_v9 }
  0x3f   : > { %2000 = vmatpush3.msra.mxu1 %v2887_v12  ;;  %2030 = vmatprep.subr.mxu0 %v2746_v2 }
  0x40   : > { %2001 = vmatprep.subr.mxu1 %v2746_v2  ;;  %2031 = vmatpush3.msra.mxu0 %v2875_v10 }
  0x41   : > { %2002 = vmatpush3.msra.mxu1 %v2893_v13  ;;  %2032 = vmatprep.subr.mxu0 %v2746_v2 }
  0x42   : > { %2003 = vmatprep.subr.mxu1 %v2746_v2  ;;  %2033 = vmatpush3.msra.mxu0 %v2881_v11 }
  0x43   : > { %2004 = vmatpush3.msra.mxu1 %v2899_v14  ;;  %2034 = vmatprep.subr.mxu0 %v2746_v2 }
  0x44   : > { %2005 = vmatprep.subr.mxu1 %v2746_v2  ;;  %2035 = vmatpush3.msra.mxu0 %v2887_v12 }
  0x45   : > { %2006 = vmatpush3.msra.mxu1 %v2905_v15  ;;  %2036 = vmatprep.subr.mxu0 %v2746_v2 }
  0x46   : > { %2007 = vmatprep.subr.mxu1 %v2746_v2  ;;  %2037 = vmatpush3.msra.mxu0 %v2893_v13 }
  0x47   : > { %2008 = vmatpush3.msra.mxu1 %v2911_v16  ;;  %2038 = vmatprep.subr.mxu0 %v2746_v2 }
  0x48   : > { %2009 = vmatprep.subr.mxu1 %v2746_v2  ;;  %2039 = vmatpush3.msra.mxu0 %v2899_v14 }
  0x49   : > { %2010 = vmatpush3.msra.mxu1 %v2917_v17  ;;  %2040 = vmatprep.subr.mxu0 %v2746_v2 }
  0x4a   : > { %2011 = vmatprep.subr.mxu1 %v2746_v2  ;;  %2041 = vmatpush3.msra.mxu0 %v2905_v15 }
  0x4b   : > { %2012 = vmatpush3.msra.mxu1 %v2923_v18  ;;  %2042 = vmatprep.subr.mxu0 %v2746_v2 }
  0x4c   : > { %2013 = vmatprep.subr.mxu1 %v2746_v2  ;;  %2043 = vmatpush3.msra.mxu0 %v2911_v16 }
  0x4d   : > { %2014 = vmatpush3.msra.mxu1 %v2929_v19  ;;  %2044 = vmatprep.subr.mxu0 %v2746_v2 }
  0x4e   : > { %2015 = vmatprep.subr.mxu1 %v2746_v2  ;;  %2045 = vmatpush3.msra.mxu0 %v2917_v17 }
  0x4f   : > { %2016 = vmatpush3.msra.mxu1 %v2935_v20  ;;  %2046 = vmatprep.subr.mxu0 %v2746_v2 }
  0x50   : > { %2018 = vmatmul.mubr.f32.vlgmr.msra.gmra.mxu1 %v280_v21  ;;  %2052 = vmatprep.mubr.msk.f32.mxu0 %vm2747_vm0, %v2746_v2 }
  0x51   : > { %2047 = vmatpush3.msra.mxu0 %v2923_v18  ;;  %2055 = vmatprep.subr.mxu1 %v2746_v2 }
  0x52   : > { %2048 = vmatprep.subr.mxu0 %v2746_v2  ;;  %2056 = vmatpush3.msra.mxu1 %v2850_v1 }
  0x53   : > { %2049 = vmatpush3.msra.mxu0 %v2929_v19  ;;  %2057 = vmatprep.subr.mxu1 %v2746_v2 }
  0x54   : > { %2050 = vmatprep.subr.mxu0 %v2746_v2  ;;  %2058 = vmatpush3.msra.mxu1 %v2853_v3 }
  0x55   : > { %2051 = vmatpush3.msra.mxu0 %v2935_v20  ;;  %2059 = vmatprep.subr.mxu1 %v2746_v2 }
  0x56   : > { %2060 = vmatpush3.msra.mxu1 %v2859_v4  ;;  %2087 = vmatprep.mubr.msk.f32.mxu1 %vm2747_vm0, %v2746_v2 }
  0x57   : > { %2061 = vmatprep.subr.mxu1 %v2746_v2  ;;  %2090 = vmatprep.subr.mxu0 %v2746_v2 }
  0x58   : > { %2062 = vmatpush3.msra.mxu1 %v2866_v8 }
  0x59   : > { %2063 = vmatprep.subr.mxu1 %v2746_v2 }
  0x5a   : > { %2064 = vmatpush3.msra.mxu1 %v2870_v9 }
  0x5b   : > { %2065 = vmatprep.subr.mxu1 %v2746_v2 }
  0x5c   : > { %2066 = vmatpush3.msra.mxu1 %v2875_v10 }
  0x5d   : > { %2067 = vmatprep.subr.mxu1 %v2746_v2 }
  0x5e   : > { %2068 = vmatpush3.msra.mxu1 %v2881_v11 }
  0x5f   : > { %2069 = vmatprep.subr.mxu1 %v2746_v2 }
  0x60   : > { %2070 = vmatpush3.msra.mxu1 %v2887_v12 }
  0x61   : > { %2071 = vmatprep.subr.mxu1 %v2746_v2 }
  0x62   : > { %2072 = vmatpush3.msra.mxu1 %v2893_v13 }
  0x63   : > { %2073 = vmatprep.subr.mxu1 %v2746_v2 }
  0x64   : > { %2074 = vmatpush3.msra.mxu1 %v2899_v14 }
  0x65   : > { %2075 = vmatprep.subr.mxu1 %v2746_v2 }
  0x66   : > { %2076 = vmatpush3.msra.mxu1 %v2905_v15 }
  0x67   : > { %2077 = vmatprep.subr.mxu1 %v2746_v2 }
  0x68   : > { %2078 = vmatpush3.msra.mxu1 %v2911_v16 }
  0x69   : > { %2079 = vmatprep.subr.mxu1 %v2746_v2 }
  0x6a   : > { %2080 = vmatpush3.msra.mxu1 %v2917_v17 }
  0x6b   : > { %2081 = vmatprep.subr.mxu1 %v2746_v2 }
  0x6c   : > { %2082 = vmatpush3.msra.mxu1 %v2923_v18 }
  0x6d   : > { %2083 = vmatprep.subr.mxu1 %v2746_v2 }
  0x6e   : > { %2084 = vmatpush3.msra.mxu1 %v2929_v19 }
  0x6f   : > { %2085 = vmatprep.subr.mxu1 %v2746_v2 }
  0x70   : > { %2086 = vmatpush3.msra.mxu1 %v2935_v20 }
  0x71   : > { %2125 = vmatprep.subr.mxu1 %v2746_v2 }
  0xf4   : > { %v2989_v22 = vpop.f32.mrf.mxu0 }
  0xf6   : > { %v2991_v23 = vpop.f32.mrf.mxu0 }
 0x110   : > { %v364_v24 = vpop.f32.mrf.mxu1 }
 0x111   : > { %v368_v25 = vadd.f32 %v364_v24, %v2991_v23 }
 0x112   : > { %v2019_v26 = vpop.f32.mrf.mxu1 }
 0x113   : > { %2602 = vtanh.f32 %v368_v25 }
 0x120   : > { %v2994_v27 = vpop.eup %2602 }
 0x121   : > { %2053 = vmatmul.mubr.f32.vlgmr.msra.gmra.mxu0 %v2994_v27 }
 0x122   : > { %2091 = vmatpush3.msra.mxu0 %v2850_v1  ;;  %2122 = vmatprep.mubr.msk.f32.mxu0 %vm2747_vm0, %v2746_v2 }
 0x123   : > { %2092 = vmatprep.subr.mxu0 %v2746_v2 }
 0x124   : > { %2093 = vmatpush3.msra.mxu0 %v2853_v3 }
 0x125   : > { %2094 = vmatprep.subr.mxu0 %v2746_v2 }
 0x126   : > { %2095 = vmatpush3.msra.mxu0 %v2859_v4 }
 0x127   : > { %2096 = vmatprep.subr.mxu0 %v2746_v2 }
 0x128   : > { %2097 = vmatpush3.msra.mxu0 %v2866_v8 }
 0x129   : > { %2098 = vmatprep.subr.mxu0 %v2746_v2 }
 0x12a   : > { %2099 = vmatpush3.msra.mxu0 %v2870_v9 }
 0x12b   : > { %2100 = vmatprep.subr.mxu0 %v2746_v2 }
 0x12c   : > { %2101 = vmatpush3.msra.mxu0 %v2875_v10 }
 0x12d   : > { %2102 = vmatprep.subr.mxu0 %v2746_v2 }
 0x12e   : > { %2103 = vmatpush3.msra.mxu0 %v2881_v11 }
 0x12f   : > { %2104 = vmatprep.subr.mxu0 %v2746_v2 }
 0x130   : > { %2105 = vmatpush3.msra.mxu0 %v2887_v12 }
 0x131   : > { %2106 = vmatprep.subr.mxu0 %v2746_v2 }
 0x132   : > { %2107 = vmatpush3.msra.mxu0 %v2893_v13 }
 0x133   : > { %2108 = vmatprep.subr.mxu0 %v2746_v2 }
 0x134   : > { %2109 = vmatpush3.msra.mxu0 %v2899_v14 }
 0x135   : > { %2110 = vmatprep.subr.mxu0 %v2746_v2 }
 0x136   : > { %2111 = vmatpush3.msra.mxu0 %v2905_v15 }
 0x137   : > { %2112 = vmatprep.subr.mxu0 %v2746_v2 }
 0x138   : > { %2113 = vmatpush3.msra.mxu0 %v2911_v16 }
 0x139   : > { %2114 = vmatprep.subr.mxu0 %v2746_v2 }
 0x13a   : > { %2115 = vmatpush3.msra.mxu0 %v2917_v17 }
 0x13b   : > { %2116 = vmatprep.subr.mxu0 %v2746_v2 }
 0x13c   : > { %2117 = vmatpush3.msra.mxu0 %v2923_v18 }
 0x13d   : > { %2118 = vmatprep.subr.mxu0 %v2746_v2 }
 0x13e   : > { %2119 = vmatpush3.msra.mxu0 %v2929_v19 }
 0x13f   : > { %2120 = vmatprep.subr.mxu0 %v2746_v2 }
 0x140   : > { %2121 = vmatpush3.msra.mxu0 %v2935_v20 }
 0x141   : > { %2160 = vmatprep.subr.mxu0 %v2746_v2 }
 0x1e1   : > { %v436_v28 = vpop.f32.mrf.mxu0 }
 0x1e2   : > { %v441_v29 = vrot.slane %v436_v28, 7 }
 0x1e3   : > { %v2054_v30 = vpop.f32.mrf.mxu0 }
 0x1e4   : > { %v443_v31 = vadd.f32 %v441_v29, %v2991_v23 }
 0x1e6   : > { %2604 = vtanh.f32 %v443_v31 }
 0x1f3   : > { %v2605_v32 = vpop.eup %2604 }
 0x1f4   : > { %v446_v33 = vrot.slane %v2605_v32, 1  ;;  %v914_v39 = vsel %vm913_vm2, %v2994_v27, %v2605_v32 }
 0x1f6   : > { %2088 = vmatmul.mubr.f32.vlgmr.msra.gmra.mxu1 %v446_v33 }
 0x1f7   : > { %2126 = vmatpush3.msra.mxu1 %v2850_v1  ;;  %2157 = vmatprep.mubr.msk.f32.mxu1 %vm2747_vm0, %v2746_v2 }
 0x1f8   : > { %2127 = vmatprep.subr.mxu1 %v2746_v2 }
 0x1f9   : > { %2128 = vmatpush3.msra.mxu1 %v2853_v3 }
 0x1fa   : > { %2129 = vmatprep.subr.mxu1 %v2746_v2 }
 0x1fb   : > { %2130 = vmatpush3.msra.mxu1 %v2859_v4 }
 0x1fc   : > { %2131 = vmatprep.subr.mxu1 %v2746_v2 }
 0x1fd   : > { %2132 = vmatpush3.msra.mxu1 %v2866_v8 }
 0x1fe   : > { %2133 = vmatprep.subr.mxu1 %v2746_v2 }
 0x1ff   : > { %2134 = vmatpush3.msra.mxu1 %v2870_v9 }
 0x200   : > { %2135 = vmatprep.subr.mxu1 %v2746_v2 }
 0x201   : > { %2136 = vmatpush3.msra.mxu1 %v2875_v10 }
 0x202   : > { %2137 = vmatprep.subr.mxu1 %v2746_v2 }
 0x203   : > { %2138 = vmatpush3.msra.mxu1 %v2881_v11 }
 0x204   : > { %2139 = vmatprep.subr.mxu1 %v2746_v2 }
 0x205   : > { %2140 = vmatpush3.msra.mxu1 %v2887_v12 }
 0x206   : > { %2141 = vmatprep.subr.mxu1 %v2746_v2 }
 0x207   : > { %2142 = vmatpush3.msra.mxu1 %v2893_v13 }
 0x208   : > { %2143 = vmatprep.subr.mxu1 %v2746_v2 }
 0x209   : > { %2144 = vmatpush3.msra.mxu1 %v2899_v14 }
 0x20a   : > { %2145 = vmatprep.subr.mxu1 %v2746_v2 }
 0x20b   : > { %2146 = vmatpush3.msra.mxu1 %v2905_v15 }
 0x20c   : > { %2147 = vmatprep.subr.mxu1 %v2746_v2 }
 0x20d   : > { %2148 = vmatpush3.msra.mxu1 %v2911_v16 }
 0x20e   : > { %2149 = vmatprep.subr.mxu1 %v2746_v2 }
 0x20f   : > { %2150 = vmatpush3.msra.mxu1 %v2917_v17 }
 0x210   : > { %2151 = vmatprep.subr.mxu1 %v2746_v2 }
 0x211   : > { %2152 = vmatpush3.msra.mxu1 %v2923_v18 }
 0x212   : > { %2153 = vmatprep.subr.mxu1 %v2746_v2 }
 0x213   : > { %2154 = vmatpush3.msra.mxu1 %v2929_v19 }
 0x214   : > { %2155 = vmatprep.subr.mxu1 %v2746_v2 }
 0x215   : > { %2156 = vmatpush3.msra.mxu1 %v2935_v20 }
 0x216   : > { %2195 = vmatprep.subr.mxu1 %v2746_v2 }
 0x2b6   : > { %v514_v34 = vpop.f32.mrf.mxu1 }
 0x2b7   : > { %v519_v35 = vrot.slane %v514_v34, 6 }
 0x2b8   : > { %v2089_v36 = vpop.f32.mrf.mxu1 }
 0x2b9   : > { %v521_v37 = vadd.f32 %v519_v35, %v2991_v23 }
 0x2bb   : > { %2606 = vtanh.f32 %v521_v37 }
 0x2c8   : > { %v2607_v38 = vpop.eup %2606 }
 0x2c9   : > { %v916_v40 = vsel %vm915_vm3, %v914_v39, %v2607_v38  ;;  %v524_v41 = vrot.slane %v2607_v38, 2  ;;  %v3324_v38 = vld [vmem:[#allocation3 + $0x78] sm:$0xff]  ;;  %v3330_v39 = vld [vmem:[#allocation3 + $0x70] sm:$0xff] }
 0x2cb   : > { %2123 = vmatmul.mubr.f32.vlgmr.msra.gmra.mxu0 %v524_v41  ;;  %v3396_v41 = vld [vmem:[#allocation3 + $0x38] sm:$0xff] }
 0x2cc   : > { %2161 = vmatpush3.msra.mxu0 %v2850_v1  ;;  %2192 = vmatprep.mubr.msk.f32.mxu0 %vm2747_vm0, %v2746_v2 }
 0x2cd   : > { %2162 = vmatprep.subr.mxu0 %v2746_v2 }
 0x2ce   : > { %2163 = vmatpush3.msra.mxu0 %v2853_v3 }
 0x2cf   : > { %2164 = vmatprep.subr.mxu0 %v2746_v2 }
 0x2d0   : > { %2165 = vmatpush3.msra.mxu0 %v2859_v4 }
 0x2d1   : > { %2166 = vmatprep.subr.mxu0 %v2746_v2 }
 0x2d2   : > { %2167 = vmatpush3.msra.mxu0 %v2866_v8 }
 0x2d3   : > { %2168 = vmatprep.subr.mxu0 %v2746_v2 }
 0x2d4   : > { %2169 = vmatpush3.msra.mxu0 %v2870_v9 }
 0x2d5   : > { %2170 = vmatprep.subr.mxu0 %v2746_v2 }
 0x2d6   : > { %2171 = vmatpush3.msra.mxu0 %v2875_v10 }
 0x2d7   : > { %2172 = vmatprep.subr.mxu0 %v2746_v2 }
 0x2d8   : > { %2173 = vmatpush3.msra.mxu0 %v2881_v11 }
 0x2d9   : > { %2174 = vmatprep.subr.mxu0 %v2746_v2 }
 0x2da   : > { %2175 = vmatpush3.msra.mxu0 %v2887_v12 }
 0x2db   : > { %2176 = vmatprep.subr.mxu0 %v2746_v2 }
 0x2dc   : > { %2177 = vmatpush3.msra.mxu0 %v2893_v13 }
 0x2dd   : > { %2178 = vmatprep.subr.mxu0 %v2746_v2 }
 0x2de   : > { %2179 = vmatpush3.msra.mxu0 %v2899_v14 }
 0x2df   : > { %2180 = vmatprep.subr.mxu0 %v2746_v2 }
 0x2e0   : > { %2181 = vmatpush3.msra.mxu0 %v2905_v15 }
 0x2e1   : > { %2182 = vmatprep.subr.mxu0 %v2746_v2 }
 0x2e2   : > { %2183 = vmatpush3.msra.mxu0 %v2911_v16 }
 0x2e3   : > { %2184 = vmatprep.subr.mxu0 %v2746_v2 }
 0x2e4   : > { %2185 = vmatpush3.msra.mxu0 %v2917_v17 }
 0x2e5   : > { %2186 = vmatprep.subr.mxu0 %v2746_v2 }
 0x2e6   : > { %2187 = vmatpush3.msra.mxu0 %v2923_v18 }
 0x2e7   : > { %2188 = vmatprep.subr.mxu0 %v2746_v2 }
 0x2e8   : > { %2189 = vmatpush3.msra.mxu0 %v2929_v19 }
 0x2e9   : > { %2190 = vmatprep.subr.mxu0 %v2746_v2 }
 0x2ea   : > { %2191 = vmatpush3.msra.mxu0 %v2935_v20 }
 0x2eb   : > { %2230 = vmatprep.subr.mxu0 %v2746_v2 }
 0x38b   : > { %v592_v42 = vpop.f32.mrf.mxu0 }
 0x38c   : > { %v597_v43 = vrot.slane %v592_v42, 5  ;;  %v3400_v42 = vld [vmem:[#allocation3 + $0x30] sm:$0xff] }
 0x38d   : > { %v2124_v44 = vpop.f32.mrf.mxu0 }
 0x38e   : > { %v599_v45 = vadd.f32 %v597_v43, %v2991_v23  ;;  %v3404_v43 = vld [vmem:[#allocation3 + $0x28] sm:$0xff]  ;;  %v3408_v44 = vld [vmem:[#allocation3 + $0x20] sm:$0xff] }
 0x390   : > { %2608 = vtanh.f32 %v599_v45  ;;  %v3412_v45 = vld [vmem:[#allocation3 + $0x18] sm:$0xff] }
 0x39d   : > { %v2609_v46 = vpop.eup %2608 }
 0x39e   : > { %v918_v47 = vsel %vm917_vm4, %v916_v40, %v2609_v46  ;;  %v602_v48 = vrot.slane %v2609_v46, 3  ;;  %v3334_v40 = vld [vmem:[#allocation3 + $0x68] sm:$0xff]  ;;  %v3416_v46 = vld [vmem:[#allocation3 + $0x10] sm:$0xff] }
 0x3a0   : > { %2158 = vmatmul.mubr.f32.vlgmr.msra.gmra.mxu1 %v602_v48  ;;  %v3424_v48 = vld [vmem:[#allocation3] sm:$0xff] }
 0x3a1   : > { %2196 = vmatpush3.msra.mxu1 %v2850_v1  ;;  %2227 = vmatprep.mubr.msk.f32.mxu1 %vm2747_vm0, %v2746_v2 }
 0x3a2   : > { %2197 = vmatprep.subr.mxu1 %v2746_v2 }
 0x3a3   : > { %2198 = vmatpush3.msra.mxu1 %v2853_v3 }
 0x3a4   : > { %2199 = vmatprep.subr.mxu1 %v2746_v2 }
 0x3a5   : > { %2200 = vmatpush3.msra.mxu1 %v2859_v4 }
 0x3a6   : > { %2201 = vmatprep.subr.mxu1 %v2746_v2 }
 0x3a7   : > { %2202 = vmatpush3.msra.mxu1 %v2866_v8 }
 0x3a8   : > { %2203 = vmatprep.subr.mxu1 %v2746_v2 }
 0x3a9   : > { %2204 = vmatpush3.msra.mxu1 %v2870_v9 }
 0x3aa   : > { %2205 = vmatprep.subr.mxu1 %v2746_v2 }
 0x3ab   : > { %2206 = vmatpush3.msra.mxu1 %v2875_v10 }
 0x3ac   : > { %2207 = vmatprep.subr.mxu1 %v2746_v2 }
 0x3ad   : > { %2208 = vmatpush3.msra.mxu1 %v2881_v11 }
 0x3ae   : > { %2209 = vmatprep.subr.mxu1 %v2746_v2 }
 0x3af   : > { %2210 = vmatpush3.msra.mxu1 %v2887_v12 }
 0x3b0   : > { %2211 = vmatprep.subr.mxu1 %v2746_v2 }
 0x3b1   : > { %2212 = vmatpush3.msra.mxu1 %v2893_v13 }
 0x3b2   : > { %2213 = vmatprep.subr.mxu1 %v2746_v2 }
 0x3b3   : > { %2214 = vmatpush3.msra.mxu1 %v2899_v14 }
 0x3b4   : > { %2215 = vmatprep.subr.mxu1 %v2746_v2 }
 0x3b5   : > { %2216 = vmatpush3.msra.mxu1 %v2905_v15 }
 0x3b6   : > { %2217 = vmatprep.subr.mxu1 %v2746_v2 }
 0x3b7   : > { %2218 = vmatpush3.msra.mxu1 %v2911_v16 }
 0x3b8   : > { %2219 = vmatprep.subr.mxu1 %v2746_v2 }
 0x3b9   : > { %2220 = vmatpush3.msra.mxu1 %v2917_v17 }
 0x3ba   : > { %2221 = vmatprep.subr.mxu1 %v2746_v2 }
 0x3bb   : > { %2222 = vmatpush3.msra.mxu1 %v2923_v18 }
 0x3bc   : > { %2223 = vmatprep.subr.mxu1 %v2746_v2 }
 0x3bd   : > { %2224 = vmatpush3.msra.mxu1 %v2929_v19 }
 0x3be   : > { %2225 = vmatprep.subr.mxu1 %v2746_v2 }
 0x3bf   : > { %2226 = vmatpush3.msra.mxu1 %v2935_v20 }
 0x3c0   : > { %2265 = vmatprep.subr.mxu1 %v2746_v2 }
 0x460   : > { %v670_v49 = vpop.f32.mrf.mxu1 }
 0x461   : > { %v675_v50 = vrot.slane %v670_v49, 4 }
 0x462   : > { %v2159_v51 = vpop.f32.mrf.mxu1 }
 0x463   : > { %v677_v52 = vadd.f32 %v675_v50, %v2991_v23 }
 0x465   : > { %2610 = vtanh.f32 %v677_v52 }
 0x472   : > { %v2611_v53 = vpop.eup %2610 }
 0x473   : > { %v920_v54 = vsel %vm919_vm5, %v918_v47, %v2611_v53  ;;  %v680_v55 = vrot.slane %v2611_v53, 4  ;;  %v3420_v47 = vld [vmem:[#allocation3 + $0x8] sm:$0xff] }
 0x475   : > { %2193 = vmatmul.mubr.f32.vlgmr.msra.gmra.mxu0 %v680_v55 }
 0x476   : > { %2231 = vmatpush3.msra.mxu0 %v2850_v1  ;;  %2262 = vmatprep.mubr.msk.f32.mxu0 %vm2747_vm0, %v2746_v2 }
 0x477   : > { %2232 = vmatprep.subr.mxu0 %v2746_v2 }
 0x478   : > { %2233 = vmatpush3.msra.mxu0 %v2853_v3 }
 0x479   : > { %2234 = vmatprep.subr.mxu0 %v2746_v2 }
 0x47a   : > { %2235 = vmatpush3.msra.mxu0 %v2859_v4 }
 0x47b   : > { %2236 = vmatprep.subr.mxu0 %v2746_v2 }
 0x47c   : > { %2237 = vmatpush3.msra.mxu0 %v2866_v8 }
 0x47d   : > { %2238 = vmatprep.subr.mxu0 %v2746_v2 }
 0x47e   : > { %2239 = vmatpush3.msra.mxu0 %v2870_v9 }
 0x47f   : > { %2240 = vmatprep.subr.mxu0 %v2746_v2 }
 0x480   : > { %2241 = vmatpush3.msra.mxu0 %v2875_v10 }
 0x481   : > { %2242 = vmatprep.subr.mxu0 %v2746_v2 }
 0x482   : > { %2243 = vmatpush3.msra.mxu0 %v2881_v11 }
 0x483   : > { %2244 = vmatprep.subr.mxu0 %v2746_v2 }
 0x484   : > { %2245 = vmatpush3.msra.mxu0 %v2887_v12 }
 0x485   : > { %2246 = vmatprep.subr.mxu0 %v2746_v2 }
 0x486   : > { %2247 = vmatpush3.msra.mxu0 %v2893_v13 }
 0x487   : > { %2248 = vmatprep.subr.mxu0 %v2746_v2 }
 0x488   : > { %2249 = vmatpush3.msra.mxu0 %v2899_v14 }
 0x489   : > { %2250 = vmatprep.subr.mxu0 %v2746_v2 }
 0x48a   : > { %2251 = vmatpush3.msra.mxu0 %v2905_v15 }
 0x48b   : > { %2252 = vmatprep.subr.mxu0 %v2746_v2 }
 0x48c   : > { %2253 = vmatpush3.msra.mxu0 %v2911_v16 }
 0x48d   : > { %2254 = vmatprep.subr.mxu0 %v2746_v2 }
 0x48e   : > { %2255 = vmatpush3.msra.mxu0 %v2917_v17 }
 0x48f   : > { %2256 = vmatprep.subr.mxu0 %v2746_v2 }
 0x490   : > { %2257 = vmatpush3.msra.mxu0 %v2923_v18 }
 0x491   : > { %2258 = vmatprep.subr.mxu0 %v2746_v2 }
 0x492   : > { %2259 = vmatpush3.msra.mxu0 %v2929_v19 }
 0x493   : > { %2260 = vmatprep.subr.mxu0 %v2746_v2 }
 0x494   : > { %2261 = vmatpush3.msra.mxu0 %v2935_v20 }
 0x495   : > { %2300 = vmatprep.subr.mxu0 %v2746_v2 }
 0x535   : > { %v748_v56 = vpop.f32.mrf.mxu0 }
 0x536   : > { %v753_v57 = vrot.slane %v748_v56, 3 }
 0x537   : > { %v2194_v58 = vpop.f32.mrf.mxu0 }
 0x538   : > { %v755_v59 = vadd.f32 %v753_v57, %v2991_v23 }
 0x53a   : > { %2612 = vtanh.f32 %v755_v59 }
 0x547   : > { %v2613_v60 = vpop.eup %2612 }
 0x548   : > { %v922_v61 = vsel %vm921_vm6, %v920_v54, %v2613_v60  ;;  %v758_v62 = vrot.slane %v2613_v60, 5 }
 0x54a   : > { %2228 = vmatmul.mubr.f32.vlgmr.msra.gmra.mxu1 %v758_v62 }
 0x54b   : > { %2266 = vmatpush3.msra.mxu1 %v2850_v1  ;;  %2297 = vmatprep.mubr.msk.f32.mxu1 %vm2747_vm0, %v2746_v2 }
 0x54c   : > { %2267 = vmatprep.subr.mxu1 %v2746_v2 }
 0x54d   : > { %2268 = vmatpush3.msra.mxu1 %v2853_v3 }
 0x54e   : > { %2269 = vmatprep.subr.mxu1 %v2746_v2 }
 0x54f   : > { %2270 = vmatpush3.msra.mxu1 %v2859_v4 }
 0x550   : > { %2271 = vmatprep.subr.mxu1 %v2746_v2 }
 0x551   : > { %2272 = vmatpush3.msra.mxu1 %v2866_v8 }
 0x552   : > { %2273 = vmatprep.subr.mxu1 %v2746_v2 }
 0x553   : > { %2274 = vmatpush3.msra.mxu1 %v2870_v9 }
 0x554   : > { %2275 = vmatprep.subr.mxu1 %v2746_v2 }
 0x555   : > { %2276 = vmatpush3.msra.mxu1 %v2875_v10 }
 0x556   : > { %2277 = vmatprep.subr.mxu1 %v2746_v2 }
 0x557   : > { %2278 = vmatpush3.msra.mxu1 %v2881_v11 }
 0x558   : > { %2279 = vmatprep.subr.mxu1 %v2746_v2 }
 0x559   : > { %2280 = vmatpush3.msra.mxu1 %v2887_v12 }
 0x55a   : > { %2281 = vmatprep.subr.mxu1 %v2746_v2 }
 0x55b   : > { %2282 = vmatpush3.msra.mxu1 %v2893_v13 }
 0x55c   : > { %2283 = vmatprep.subr.mxu1 %v2746_v2 }
 0x55d   : > { %2284 = vmatpush3.msra.mxu1 %v2899_v14 }
 0x55e   : > { %2285 = vmatprep.subr.mxu1 %v2746_v2 }
 0x55f   : > { %2286 = vmatpush3.msra.mxu1 %v2905_v15 }
 0x560   : > { %2287 = vmatprep.subr.mxu1 %v2746_v2 }
 0x561   : > { %2288 = vmatpush3.msra.mxu1 %v2911_v16 }
 0x562   : > { %2289 = vmatprep.subr.mxu1 %v2746_v2 }
 0x563   : > { %2290 = vmatpush3.msra.mxu1 %v2917_v17 }
 0x564   : > { %2291 = vmatprep.subr.mxu1 %v2746_v2 }
 0x565   : > { %2292 = vmatpush3.msra.mxu1 %v2923_v18 }
 0x566   : > { %2293 = vmatprep.subr.mxu1 %v2746_v2 }
 0x567   : > { %2294 = vmatpush3.msra.mxu1 %v2929_v19 }
 0x568   : > { %2295 = vmatprep.subr.mxu1 %v2746_v2 }
 0x569   : > { %2296 = vmatpush3.msra.mxu1 %v2935_v20 }
 0x56a   : > { %2335 = vmatprep.subr.mxu1 %v2746_v2 }
 0x60a   : > { %v826_v63 = vpop.f32.mrf.mxu1 }
 0x60b   : > { %v831_v0 = vrot.slane %v826_v63, 2 }
 0x60c   : > { %v2229_v5 = vpop.f32.mrf.mxu1 }
 0x60d   : > { %v833_v6 = vadd.f32 %v831_v0, %v2991_v23 }
 0x60f   : > { %2614 = vtanh.f32 %v833_v6 }
 0x61c   : > { %v2615_v7 = vpop.eup %2614 }
 0x61d   : > { %v924_v21 = vsel %vm923_vm7, %v922_v61, %v2615_v7  ;;  %v836_v24 = vrot.slane %v2615_v7, 6 }
 0x61f   : > { %2263 = vmatmul.mubr.f32.vlgmr.msra.gmra.mxu0 %v836_v24 }
 0x620   : > { %2301 = vmatpush3.msra.mxu0 %v2850_v1  ;;  %2332 = vmatprep.mubr.msk.f32.mxu0 %vm2747_vm0, %v2746_v2 }
 0x621   : > { %2302 = vmatprep.subr.mxu0 %v2746_v2 }
 0x622   : > { %2303 = vmatpush3.msra.mxu0 %v2853_v3 }
 0x623   : > { %2304 = vmatprep.subr.mxu0 %v2746_v2 }
 0x624   : > { %2305 = vmatpush3.msra.mxu0 %v2859_v4 }
 0x625   : > { %2306 = vmatprep.subr.mxu0 %v2746_v2 }
 0x626   : > { %2307 = vmatpush3.msra.mxu0 %v2866_v8 }
 0x627   : > { %2308 = vmatprep.subr.mxu0 %v2746_v2 }
 0x628   : > { %2309 = vmatpush3.msra.mxu0 %v2870_v9 }
 0x629   : > { %2310 = vmatprep.subr.mxu0 %v2746_v2 }
 0x62a   : > { %2311 = vmatpush3.msra.mxu0 %v2875_v10 }
 0x62b   : > { %2312 = vmatprep.subr.mxu0 %v2746_v2 }
 0x62c   : > { %2313 = vmatpush3.msra.mxu0 %v2881_v11 }
 0x62d   : > { %2314 = vmatprep.subr.mxu0 %v2746_v2 }
 0x62e   : > { %2315 = vmatpush3.msra.mxu0 %v2887_v12 }
 0x62f   : > { %2316 = vmatprep.subr.mxu0 %v2746_v2 }
 0x630   : > { %2317 = vmatpush3.msra.mxu0 %v2893_v13 }
 0x631   : > { %2318 = vmatprep.subr.mxu0 %v2746_v2 }
 0x632   : > { %2319 = vmatpush3.msra.mxu0 %v2899_v14 }
 0x633   : > { %2320 = vmatprep.subr.mxu0 %v2746_v2 }
 0x634   : > { %2321 = vmatpush3.msra.mxu0 %v2905_v15 }
 0x635   : > { %2322 = vmatprep.subr.mxu0 %v2746_v2 }
 0x636   : > { %2323 = vmatpush3.msra.mxu0 %v2911_v16 }
 0x637   : > { %2324 = vmatprep.subr.mxu0 %v2746_v2 }
 0x638   : > { %2325 = vmatpush3.msra.mxu0 %v2917_v17 }
 0x639   : > { %2326 = vmatprep.subr.mxu0 %v2746_v2 }
 0x63a   : > { %2327 = vmatpush3.msra.mxu0 %v2923_v18 }
 0x63b   : > { %2328 = vmatprep.subr.mxu0 %v2746_v2 }
 0x63c   : > { %2329 = vmatpush3.msra.mxu0 %v2929_v19 }
 0x63d   : > { %2330 = vmatprep.subr.mxu0 %v2746_v2 }
 0x63e   : > { %2331 = vmatpush3.msra.mxu0 %v2935_v20 }
 0x63f   : > { %2370 = vmatprep.subr.mxu0 %v2746_v2 }
 0x6df   : > { %v904_v25 = vpop.f32.mrf.mxu0 }
 0x6e0   : > { %v909_v26 = vrot.slane %v904_v25, 1 }
 0x6e1   : > { %v2264_v27 = vpop.f32.mrf.mxu0 }
 0x6e2   : > { %v911_v28 = vadd.f32 %v909_v26, %v2991_v23 }
 0x6e4   : > { %2616 = vtanh.f32 %v911_v28 }
 0x6f1   : > { %v2617_v29 = vpop.eup %2616 }
 0x6f2   : > { %v926_v30 = vsel %vm925_vm8, %v924_v21, %v2617_v29  ;;  %v947_v31 = vrot.slane %v2617_v29, 7 }
 0x6f3   : > { %927 = vst [vmem:[%s2845_s17] sm:$0xff] %v926_v30 }
 0x6f4   : > { %2298 = vmatmul.mubr.f32.vlgmr.msra.gmra.mxu1 %v947_v31 }
 0x6f5   : > { %2336 = vmatpush3.msra.mxu1 %v2850_v1  ;;  %2367 = vmatprep.mubr.msk.f32.mxu1 %vm2747_vm0, %v2746_v2 }
 0x6f6   : > { %2337 = vmatprep.subr.mxu1 %v2746_v2 }
 0x6f7   : > { %2338 = vmatpush3.msra.mxu1 %v2853_v3 }
 0x6f8   : > { %2339 = vmatprep.subr.mxu1 %v2746_v2 }
 0x6f9   : > { %2340 = vmatpush3.msra.mxu1 %v2859_v4 }
 0x6fa   : > { %2341 = vmatprep.subr.mxu1 %v2746_v2 }
 0x6fb   : > { %2342 = vmatpush3.msra.mxu1 %v2866_v8 }
 0x6fc   : > { %2343 = vmatprep.subr.mxu1 %v2746_v2 }
 0x6fd   : > { %2344 = vmatpush3.msra.mxu1 %v2870_v9 }
 0x6fe   : > { %2345 = vmatprep.subr.mxu1 %v2746_v2 }
 0x6ff   : > { %2346 = vmatpush3.msra.mxu1 %v2875_v10 }
 0x700   : > { %2347 = vmatprep.subr.mxu1 %v2746_v2 }
 0x701   : > { %2348 = vmatpush3.msra.mxu1 %v2881_v11 }
 0x702   : > { %2349 = vmatprep.subr.mxu1 %v2746_v2 }
 0x703   : > { %2350 = vmatpush3.msra.mxu1 %v2887_v12 }
 0x704   : > { %2351 = vmatprep.subr.mxu1 %v2746_v2 }
 0x705   : > { %2352 = vmatpush3.msra.mxu1 %v2893_v13 }
 0x706   : > { %2353 = vmatprep.subr.mxu1 %v2746_v2 }
 0x707   : > { %2354 = vmatpush3.msra.mxu1 %v2899_v14 }
 0x708   : > { %2355 = vmatprep.subr.mxu1 %v2746_v2 }
 0x709   : > { %2356 = vmatpush3.msra.mxu1 %v2905_v15 }
 0x70a   : > { %2357 = vmatprep.subr.mxu1 %v2746_v2 }
 0x70b   : > { %2358 = vmatpush3.msra.mxu1 %v2911_v16 }
 0x70c   : > { %2359 = vmatprep.subr.mxu1 %v2746_v2 }
 0x70d   : > { %2360 = vmatpush3.msra.mxu1 %v2917_v17 }
 0x70e   : > { %2361 = vmatprep.subr.mxu1 %v2746_v2 }
 0x70f   : > { %2362 = vmatpush3.msra.mxu1 %v2923_v18 }
 0x710   : > { %2363 = vmatprep.subr.mxu1 %v2746_v2 }
 0x711   : > { %2364 = vmatpush3.msra.mxu1 %v2929_v19 }
 0x712   : > { %2365 = vmatprep.subr.mxu1 %v2746_v2 }
 0x713   : > { %2366 = vmatpush3.msra.mxu1 %v2935_v20 }
 0x714   : > { %2405 = vmatprep.subr.mxu1 %v2746_v2 }
 0x7b4   : > { %v1015_v23 = vpop.f32.mrf.mxu1 }
 0x7b5   : > { %v1019_v32 = vadd.f32 %v2989_v22, %v1015_v23 }
 0x7b6   : > { %v2299_v33 = vpop.f32.mrf.mxu1 }
 0x7b7   : > { %2618 = vtanh.f32 %v1019_v32 }
 0x7c4   : > { %v3286_v34 = vpop.eup %2618 }
 0x7c5   : > { %2333 = vmatmul.mubr.f32.vlgmr.msra.gmra.mxu0 %v3286_v34 }
 0x7c6   : > { %2371 = vmatpush3.msra.mxu0 %v2850_v1  ;;  %2402 = vmatprep.mubr.msk.f32.mxu0 %vm2747_vm0, %v2746_v2 }
 0x7c7   : > { %2372 = vmatprep.subr.mxu0 %v2746_v2 }
 0x7c8   : > { %2373 = vmatpush3.msra.mxu0 %v2853_v3 }
 0x7c9   : > { %2374 = vmatprep.subr.mxu0 %v2746_v2 }
 0x7ca   : > { %2375 = vmatpush3.msra.mxu0 %v2859_v4 }
 0x7cb   : > { %2376 = vmatprep.subr.mxu0 %v2746_v2 }
 0x7cc   : > { %2377 = vmatpush3.msra.mxu0 %v2866_v8 }
 0x7cd   : > { %2378 = vmatprep.subr.mxu0 %v2746_v2 }
 0x7ce   : > { %2379 = vmatpush3.msra.mxu0 %v2870_v9 }
 0x7cf   : > { %2380 = vmatprep.subr.mxu0 %v2746_v2 }
 0x7d0   : > { %2381 = vmatpush3.msra.mxu0 %v2875_v10 }
 0x7d1   : > { %2382 = vmatprep.subr.mxu0 %v2746_v2 }
 0x7d2   : > { %2383 = vmatpush3.msra.mxu0 %v2881_v11 }
 0x7d3   : > { %2384 = vmatprep.subr.mxu0 %v2746_v2 }
 0x7d4   : > { %2385 = vmatpush3.msra.mxu0 %v2887_v12 }
 0x7d5   : > { %2386 = vmatprep.subr.mxu0 %v2746_v2 }
 0x7d6   : > { %2387 = vmatpush3.msra.mxu0 %v2893_v13 }
 0x7d7   : > { %2388 = vmatprep.subr.mxu0 %v2746_v2 }
 0x7d8   : > { %2389 = vmatpush3.msra.mxu0 %v2899_v14 }
 0x7d9   : > { %2390 = vmatprep.subr.mxu0 %v2746_v2 }
 0x7da   : > { %2391 = vmatpush3.msra.mxu0 %v2905_v15 }
 0x7db   : > { %2392 = vmatprep.subr.mxu0 %v2746_v2 }
 0x7dc   : > { %2393 = vmatpush3.msra.mxu0 %v2911_v16 }
 0x7dd   : > { %2394 = vmatprep.subr.mxu0 %v2746_v2 }
 0x7de   : > { %2395 = vmatpush3.msra.mxu0 %v2917_v17 }
 0x7df   : > { %2396 = vmatprep.subr.mxu0 %v2746_v2 }
 0x7e0   : > { %2397 = vmatpush3.msra.mxu0 %v2923_v18 }
 0x7e1   : > { %2398 = vmatprep.subr.mxu0 %v2746_v2 }
 0x7e2   : > { %2399 = vmatpush3.msra.mxu0 %v2929_v19 }
 0x7e3   : > { %2400 = vmatprep.subr.mxu0 %v2746_v2 }
 0x7e4   : > { %2401 = vmatpush3.msra.mxu0 %v2935_v20 }
 0x7e5   : > { %2440 = vmatprep.subr.mxu0 %v2746_v2 }
 0x885   : > { %v1087_v1 = vpop.f32.mrf.mxu0 }
 0x886   : > { %v1092_v3 = vrot.slane %v1087_v1, 7 }
 0x887   : > { %v2334_v4 = vpop.f32.mrf.mxu0 }
 0x888   : > { %v1094_v35 = vadd.f32 %v2989_v22, %v1092_v3 }
 0x88a   : > { %2620 = vtanh.f32 %v1094_v35 }
 0x897   : > { %v2621_v36 = vpop.eup %2620 }
 0x898   : > { %v1097_v37 = vrot.slane %v2621_v36, 1 }
 0x89a   : > { %2368 = vmatmul.mubr.f32.vlgmr.msra.gmra.mxu1 %v1097_v37 }
 0x89b   : > { %2406 = vmatpush3.msra.mxu1 %v3324_v38  ;;  %2437 = vmatprep.mubr.msk.f32.mxu1 %vm2747_vm0, %v2746_v2 }
 0x89c   : > { %2407 = vmatprep.subr.mxu1 %v2746_v2 }
 0x89d   : > { %2408 = vmatpush3.msra.mxu1 %v3330_v39 }
 0x89e   : > { %2409 = vmatprep.subr.mxu1 %v2746_v2 }
 0x89f   : > { %2410 = vmatpush3.msra.mxu1 %v3334_v40 }
 0x8a0   : > { %2411 = vmatprep.subr.mxu1 %v2746_v2 }
 0x8a1   : > { %2412 = vmatpush3.msra.mxu1 %v2866_v8 }
 0x8a2   : > { %2413 = vmatprep.subr.mxu1 %v2746_v2 }
 0x8a3   : > { %2414 = vmatpush3.msra.mxu1 %v2870_v9 }
 0x8a4   : > { %2415 = vmatprep.subr.mxu1 %v2746_v2 }
 0x8a5   : > { %2416 = vmatpush3.msra.mxu1 %v2875_v10 }
 0x8a6   : > { %2417 = vmatprep.subr.mxu1 %v2746_v2 }
 0x8a7   : > { %2418 = vmatpush3.msra.mxu1 %v2881_v11 }
 0x8a8   : > { %2419 = vmatprep.subr.mxu1 %v2746_v2 }
 0x8a9   : > { %2420 = vmatpush3.msra.mxu1 %v2887_v12 }
 0x8aa   : > { %2421 = vmatprep.subr.mxu1 %v2746_v2 }
 0x8ab   : > { %2422 = vmatpush3.msra.mxu1 %v2893_v13  ;;  %v1564_v13 = vsel %vm913_vm2, %v3286_v34, %v2621_v36 }
 0x8ac   : > { %2423 = vmatprep.subr.mxu1 %v2746_v2 }
 0x8ad   : > { %2424 = vmatpush3.msra.mxu1 %v2899_v14 }
 0x8ae   : > { %2425 = vmatprep.subr.mxu1 %v2746_v2 }
 0x8af   : > { %2426 = vmatpush3.msra.mxu1 %v2905_v15 }
 0x8b0   : > { %2427 = vmatprep.subr.mxu1 %v2746_v2 }
 0x8b1   : > { %2428 = vmatpush3.msra.mxu1 %v2911_v16  ;;  %v3376_v16 = vld [vmem:[#allocation3 + $0x60] sm:$0xff] }
 0x8b2   : > { %2429 = vmatprep.subr.mxu1 %v2746_v2 }
 0x8b3   : > { %2430 = vmatpush3.msra.mxu1 %v2917_v17  ;;  %v3380_v17 = vld [vmem:[#allocation3 + $0x58] sm:$0xff] }
 0x8b4   : > { %2431 = vmatprep.subr.mxu1 %v2746_v2 }
 0x8b5   : > { %2432 = vmatpush3.msra.mxu1 %v2923_v18  ;;  %v3384_v18 = vld [vmem:[#allocation3 + $0x50] sm:$0xff] }
 0x8b6   : > { %2433 = vmatprep.subr.mxu1 %v2746_v2 }
 0x8b7   : > { %2434 = vmatpush3.msra.mxu1 %v2929_v19  ;;  %v3388_v19 = vld [vmem:[#allocation3 + $0x48] sm:$0xff] }
 0x8b8   : > { %2435 = vmatprep.subr.mxu1 %v2746_v2 }
 0x8b9   : > { %2436 = vmatpush3.msra.mxu1 %v2935_v20  ;;  %v3392_v20 = vld [vmem:[#allocation3 + $0x40] sm:$0xff] }
 0x8ba   : > { %2475 = vmatprep.subr.mxu1 %v2746_v2 }
 0x95a   : > { %v1165_v8 = vpop.f32.mrf.mxu1 }
 0x95b   : > { %v1170_v9 = vrot.slane %v1165_v8, 6 }
 0x95c   : > { %v2369_v10 = vpop.f32.mrf.mxu1 }
 0x95d   : > { %v1172_v11 = vadd.f32 %v2989_v22, %v1170_v9 }
 0x95f   : > { %2622 = vtanh.f32 %v1172_v11 }
 0x96c   : > { %v2623_v12 = vpop.eup %2622 }
 0x96d   : > { %v1565_v14 = vsel %vm915_vm3, %v1564_v13, %v2623_v12  ;;  %v1175_v15 = vrot.slane %v2623_v12, 2 }
 0x96f   : > { %2403 = vmatmul.mubr.f32.vlgmr.msra.gmra.mxu0 %v1175_v15 }
 0x970   : > { %2441 = vmatpush3.msra.mxu0 %v3324_v38  ;;  %2472 = vmatprep.mubr.msk.f32.mxu0 %vm2747_vm0, %v2746_v2 }
 0x971   : > { %2442 = vmatprep.subr.mxu0 %v2746_v2 }
 0x972   : > { %2443 = vmatpush3.msra.mxu0 %v3330_v39 }
 0x973   : > { %2444 = vmatprep.subr.mxu0 %v2746_v2 }
 0x974   : > { %2445 = vmatpush3.msra.mxu0 %v3334_v40 }
 0x975   : > { %2446 = vmatprep.subr.mxu0 %v2746_v2 }
 0x976   : > { %2447 = vmatpush3.msra.mxu0 %v3376_v16 }
 0x977   : > { %2448 = vmatprep.subr.mxu0 %v2746_v2 }
 0x978   : > { %2449 = vmatpush3.msra.mxu0 %v3380_v17 }
 0x979   : > { %2450 = vmatprep.subr.mxu0 %v2746_v2 }
 0x97a   : > { %2451 = vmatpush3.msra.mxu0 %v3384_v18 }
 0x97b   : > { %2452 = vmatprep.subr.mxu0 %v2746_v2 }
 0x97c   : > { %2453 = vmatpush3.msra.mxu0 %v3388_v19 }
 0x97d   : > { %2454 = vmatprep.subr.mxu0 %v2746_v2 }
 0x97e   : > { %2455 = vmatpush3.msra.mxu0 %v3392_v20 }
 0x97f   : > { %2456 = vmatprep.subr.mxu0 %v2746_v2 }
 0x980   : > { %2457 = vmatpush3.msra.mxu0 %v3396_v41 }
 0x981   : > { %2458 = vmatprep.subr.mxu0 %v2746_v2 }
 0x982   : > { %2459 = vmatpush3.msra.mxu0 %v3400_v42 }
 0x983   : > { %2460 = vmatprep.subr.mxu0 %v2746_v2 }
 0x984   : > { %2461 = vmatpush3.msra.mxu0 %v3404_v43 }
 0x985   : > { %2462 = vmatprep.subr.mxu0 %v2746_v2 }
 0x986   : > { %2463 = vmatpush3.msra.mxu0 %v3408_v44 }
 0x987   : > { %2464 = vmatprep.subr.mxu0 %v2746_v2 }
 0x988   : > { %2465 = vmatpush3.msra.mxu0 %v3412_v45 }
 0x989   : > { %2466 = vmatprep.subr.mxu0 %v2746_v2 }
 0x98a   : > { %2467 = vmatpush3.msra.mxu0 %v3416_v46 }
 0x98b   : > { %2468 = vmatprep.subr.mxu0 %v2746_v2 }
 0x98c   : > { %2469 = vmatpush3.msra.mxu0 %v3420_v47 }
 0x98d   : > { %2470 = vmatprep.subr.mxu0 %v2746_v2 }
 0x98e   : > { %2471 = vmatpush3.msra.mxu0 %v3424_v48 }
 0x98f   : > { %2510 = vmatprep.subr.mxu0 %v2746_v2 }
 0xa2f   : > { %v1243_v49 = vpop.f32.mrf.mxu0 }
 0xa30   : > { %v1248_v50 = vrot.slane %v1243_v49, 5 }
 0xa31   : > { %v2404_v51 = vpop.f32.mrf.mxu0 }
 0xa32   : > { %v1250_v52 = vadd.f32 %v2989_v22, %v1248_v50 }
 0xa34   : > { %2624 = vtanh.f32 %v1250_v52 }
 0xa41   : > { %v2625_v53 = vpop.eup %2624 }
 0xa42   : > { %v1566_v54 = vsel %vm917_vm4, %v1565_v14, %v2625_v53  ;;  %v1253_v55 = vrot.slane %v2625_v53, 3 }
 0xa44   : > { %2438 = vmatmul.mubr.f32.vlgmr.msra.gmra.mxu1 %v1253_v55 }
 0xa45   : > { %2476 = vmatpush3.msra.mxu1 %v3324_v38  ;;  %2507 = vmatprep.mubr.msk.f32.mxu1 %vm2747_vm0, %v2746_v2 }
 0xa46   : > { %2477 = vmatprep.subr.mxu1 %v2746_v2 }
 0xa47   : > { %2478 = vmatpush3.msra.mxu1 %v3330_v39 }
 0xa48   : > { %2479 = vmatprep.subr.mxu1 %v2746_v2 }
 0xa49   : > { %2480 = vmatpush3.msra.mxu1 %v3334_v40 }
 0xa4a   : > { %2481 = vmatprep.subr.mxu1 %v2746_v2 }
 0xa4b   : > { %2482 = vmatpush3.msra.mxu1 %v3376_v16 }
 0xa4c   : > { %2483 = vmatprep.subr.mxu1 %v2746_v2 }
 0xa4d   : > { %2484 = vmatpush3.msra.mxu1 %v3380_v17 }
 0xa4e   : > { %2485 = vmatprep.subr.mxu1 %v2746_v2 }
 0xa4f   : > { %2486 = vmatpush3.msra.mxu1 %v3384_v18 }
 0xa50   : > { %2487 = vmatprep.subr.mxu1 %v2746_v2 }
 0xa51   : > { %2488 = vmatpush3.msra.mxu1 %v3388_v19 }
 0xa52   : > { %2489 = vmatprep.subr.mxu1 %v2746_v2 }
 0xa53   : > { %2490 = vmatpush3.msra.mxu1 %v3392_v20 }
 0xa54   : > { %2491 = vmatprep.subr.mxu1 %v2746_v2 }
 0xa55   : > { %2492 = vmatpush3.msra.mxu1 %v3396_v41 }
 0xa56   : > { %2493 = vmatprep.subr.mxu1 %v2746_v2 }
 0xa57   : > { %2494 = vmatpush3.msra.mxu1 %v3400_v42 }
 0xa58   : > { %2495 = vmatprep.subr.mxu1 %v2746_v2 }
 0xa59   : > { %2496 = vmatpush3.msra.mxu1 %v3404_v43 }
 0xa5a   : > { %2497 = vmatprep.subr.mxu1 %v2746_v2 }
 0xa5b   : > { %2498 = vmatpush3.msra.mxu1 %v3408_v44 }
 0xa5c   : > { %2499 = vmatprep.subr.mxu1 %v2746_v2 }
 0xa5d   : > { %2500 = vmatpush3.msra.mxu1 %v3412_v45 }
 0xa5e   : > { %2501 = vmatprep.subr.mxu1 %v2746_v2 }
 0xa5f   : > { %2502 = vmatpush3.msra.mxu1 %v3416_v46 }
 0xa60   : > { %2503 = vmatprep.subr.mxu1 %v2746_v2 }
 0xa61   : > { %2504 = vmatpush3.msra.mxu1 %v3420_v47 }
 0xa62   : > { %2505 = vmatprep.subr.mxu1 %v2746_v2 }
 0xa63   : > { %2506 = vmatpush3.msra.mxu1 %v3424_v48 }
 0xb04   : > { %v1321_v56 = vpop.f32.mrf.mxu1 }
 0xb05   : > { %v1326_v57 = vrot.slane %v1321_v56, 4 }
 0xb06   : > { %v2439_v58 = vpop.f32.mrf.mxu1 }
 0xb07   : > { %v1328_v59 = vadd.f32 %v2989_v22, %v1326_v57 }
 0xb09   : > { %2626 = vtanh.f32 %v1328_v59 }
 0xb16   : > { %v2627_v60 = vpop.eup %2626 }
 0xb17   : > { %v1567_v61 = vsel %vm919_vm5, %v1566_v54, %v2627_v60  ;;  %v1331_v62 = vrot.slane %v2627_v60, 4 }
 0xb19   : > { %2473 = vmatmul.mubr.f32.vlgmr.msra.gmra.mxu0 %v1331_v62 }
 0xb1a   : > { %2511 = vmatpush3.msra.mxu0 %v3324_v38  ;;  %2542 = vmatprep.mubr.msk.f32.mxu0 %vm2747_vm0, %v2746_v2 }
 0xb1b   : > { %2512 = vmatprep.subr.mxu0 %v2746_v2 }
 0xb1c   : > { %2513 = vmatpush3.msra.mxu0 %v3330_v39 }
 0xb1d   : > { %2514 = vmatprep.subr.mxu0 %v2746_v2 }
 0xb1e   : > { %2515 = vmatpush3.msra.mxu0 %v3334_v40 }
 0xb1f   : > { %2516 = vmatprep.subr.mxu0 %v2746_v2 }
 0xb20   : > { %2517 = vmatpush3.msra.mxu0 %v3376_v16 }
 0xb21   : > { %2518 = vmatprep.subr.mxu0 %v2746_v2 }
 0xb22   : > { %2519 = vmatpush3.msra.mxu0 %v3380_v17 }
 0xb23   : > { %2520 = vmatprep.subr.mxu0 %v2746_v2 }
 0xb24   : > { %2521 = vmatpush3.msra.mxu0 %v3384_v18 }
 0xb25   : > { %2522 = vmatprep.subr.mxu0 %v2746_v2 }
 0xb26   : > { %2523 = vmatpush3.msra.mxu0 %v3388_v19 }
 0xb27   : > { %2524 = vmatprep.subr.mxu0 %v2746_v2 }
 0xb28   : > { %2525 = vmatpush3.msra.mxu0 %v3392_v20 }
 0xb29   : > { %2526 = vmatprep.subr.mxu0 %v2746_v2 }
 0xb2a   : > { %2527 = vmatpush3.msra.mxu0 %v3396_v41 }
 0xb2b   : > { %2528 = vmatprep.subr.mxu0 %v2746_v2 }
 0xb2c   : > { %2529 = vmatpush3.msra.mxu0 %v3400_v42 }
 0xb2d   : > { %2530 = vmatprep.subr.mxu0 %v2746_v2 }
 0xb2e   : > { %2531 = vmatpush3.msra.mxu0 %v3404_v43 }
 0xb2f   : > { %2532 = vmatprep.subr.mxu0 %v2746_v2 }
 0xb30   : > { %2533 = vmatpush3.msra.mxu0 %v3408_v44 }
 0xb31   : > { %2534 = vmatprep.subr.mxu0 %v2746_v2 }
 0xb32   : > { %2535 = vmatpush3.msra.mxu0 %v3412_v45 }
 0xb33   : > { %2536 = vmatprep.subr.mxu0 %v2746_v2 }
 0xb34   : > { %2537 = vmatpush3.msra.mxu0 %v3416_v46 }
 0xb35   : > { %2538 = vmatprep.subr.mxu0 %v2746_v2 }
 0xb36   : > { %2539 = vmatpush3.msra.mxu0 %v3420_v47 }
 0xb37   : > { %2540 = vmatprep.subr.mxu0 %v2746_v2 }
 0xb38   : > { %2541 = vmatpush3.msra.mxu0 %v3424_v48 }
 0xbd9   : > { %v1399_v63 = vpop.f32.mrf.mxu0 }
 0xbda   : > { %v1404_v0 = vrot.slane %v1399_v63, 3 }
 0xbdb   : > { %v2474_v5 = vpop.f32.mrf.mxu0 }
 0xbdc   : > { %v1406_v6 = vadd.f32 %v2989_v22, %v1404_v0 }
 0xbde   : > { %2628 = vtanh.f32 %v1406_v6 }
 0xbeb   : > { %v2629_v7 = vpop.eup %2628 }
 0xbec   : > { %v1568_v21 = vsel %vm921_vm6, %v1567_v61, %v2629_v7  ;;  %v1409_v24 = vrot.slane %v2629_v7, 5 }
 0xbee   : > { %2508 = vmatmul.mubr.f32.vlgmr.msra.gmra.mxu1 %v1409_v24 }
 0xcae   : > { %v1477_v25 = vpop.f32.mrf.mxu1 }
 0xcaf   : > { %v1482_v26 = vrot.slane %v1477_v25, 2 }
 0xcb0   : > { %v2509_v27 = vpop.f32.mrf.mxu1 }
 0xcb1   : > { %v1484_v28 = vadd.f32 %v2989_v22, %v1482_v26 }
 0xcb3   : > { %2630 = vtanh.f32 %v1484_v28 }
 0xcc0   : > { %v2631_v2 = vpop.eup %2630 }
 0xcc1   : > { %v1569_v29 = vsel %vm923_vm7, %v1568_v21, %v2631_v2  ;;  %v1487_v30 = vrot.slane %v2631_v2, 6 }
 0xcc3   : > { %2543 = vmatmul.mubr.f32.vlgmr.msra.gmra.mxu0 %v1487_v30 }
 0xd83   : > { %v1555_v31 = vpop.f32.mrf.mxu0 }
 0xd84   : > { %v1560_v23 = vrot.slane %v1555_v31, 1 }
 0xd85   : > { %v2544_v32 = vpop.f32.mrf.mxu0 }
 0xd86   : > { %v1562_v33 = vadd.f32 %v2989_v22, %v1560_v23 }
 0xd88   : > { %2632 = vtanh.f32 %v1562_v33 }
 0xd93   : > { %1576 = sbr.rel (%p1698_p9) target bundleno = 3491 (0xda3), region = 44 }
 0xd95   : > { %v2633_v34 = vpop.eup %2632 }
 0xd96   : > { %v1570_v1 = vsel %vm925_vm8, %v1569_v29, %v2633_v34  ;;  %1572 = vst [vmem:[#allocation2 - $0x7] sm:$0x80] %v2633_v34 }
 0xd97   : > { %1697 = vst [vmem:[%s2845_s17 + $0x8] sm:$0xff] %v1570_v1 }
 0xd98   : > { %v1577_v3 = vlaneseq  ;;  %v1580_v4 = vstv %s1695_s19  ;;  %v1585_v36 = vld [vmem:[%s2845_s17] sm:$0xff] }
 0xd9a   : > { %v1578_v35 = vshrl.u32 %v1577_v3, 7 }
 0xd9c   : > { %v1581_v22 = vadd.s32 %v1580_v4, %v1578_v35  ;;  %v1579_v37 = vadd.s32 8, %v1578_v35 }
 0xd9e   : > { %vm1583_vm9 = vcmp.lt.s32.totalorder %v1581_v22, 10  ;;  %v1582_v38 = vadd.s32 %v1580_v4, %v1579_v37  ;;  %v1586_v39 = vld [vmem:[%s2845_s17 + $0x8] sm:$0xff] }
 0xd9f   : > { %v1591_v40 = vsel %vm1583_vm9, 0.0, %v1585_v36 }
 0xda0   : > { %1593 = vst [vmem:[%s2845_s17] sm:$0xff] %v1591_v40  ;;  %vm1584_vm10 = vcmp.lt.s32.totalorder %v1582_v38, 10 }
 0xda1   : > { %v1592_v8 = vsel %vm1584_vm10, 0.0, %v1586_v39 }
 0xda2   : > { %1594 = vst [vmem:[%s2845_s17 + $0x8] sm:$0xff] %v1592_v8 }
 0xda3 PF: > { %s1704_s25 = sshll.u32 %s2792_s16, 8  ;;  %s1609_s29 = sshll.u32 %s2845_s17, 4  ;;  %s3520_s29 = int_to_ptr.vmem [resolvable:$true] %s1609_s29 }
 0xda4   : > { %s3517_s28 = scalar_lea.hbm %s3567_s3, %s1704_s25  ;;  %s3524_s30 = scalar_lea.sflag [#allocation5], %s177_s5 }
 0xda5   : > { %s2676_s4 = scalar_lea.vmem %s3520_s29, 256  ;;  %s2748_s16 = smov [#allocation6]  }
 0xda6   : > { %p2677_p10 = scmp.ne.s32.totalorder %s3520_s29, %s2676_s4  ;;  %s2680_s6 = sshll.u32 %s2748_s16, 4  ;;  %s2681_s6 = int_to_ptr.vmem [resolvable:$false] %s2680_s6 }
 0xda7   : > { %s2682_s7 = scalar_lea.vmem %s2681_s6, 512  ;;  %p2683_p13 = scmp.lt.s32.totalorder %s3520_s29, %s2681_s6 }
 0xda8   : > { %p2678_p11 = pnand %p2677_p10, %p2809_p5  ;;  %p2684_p0 = scmp.lt.s32.totalorder %s2682_s7, %s2676_s4 }
 0xdaa   : > { %p2679_p12 = pneg %p2678_p11  ;;  %p2685_p1 = por %p2684_p0, %p2683_p13 }
 0xdac   : > { %p2686_p2 = pnand %p2685_p1, %p2679_p12 }
 0xdae   : > { %2689 = shalt.err (!%p2686_p2)
}
 0xdaf   : > { %s2690_s5 = scalar_lea.hbm %s3517_s28, 256  ;;  %s2694_s10 = scalar_lea.hbm %s3567_s3, 768 }
 0xdb0   : > { %p2691_p3 = scmp.ne.s32.totalorder %s3517_s28, %s2690_s5  ;;  %p2695_p6 = scmp.lt.s32.totalorder %s3517_s28, %s3567_s3 }
 0xdb1   : > { %p2696_p8 = scmp.lt.s32.totalorder %s2694_s10, %s2690_s5 }
 0xdb2   : > { %p2692_p4 = pnand %p2691_p3, %p2809_p5 }
 0xdb3   : > { %p2697_p9 = por %p2696_p8, %p2695_p6 }
 0xdb4   : > { %p2693_p7 = pneg %p2692_p4 }
 0xdb6   : > { %p2698_p10 = pnand %p2697_p9, %p2693_p7 }
 0xdb8   : > { %2701 = shalt.err (!%p2698_p10)
}
 0xdb9   : > { %s2749_s19 = smov 128   ;;  %s2750_s20 = smov 8  }
 0xdba   : > { %2549 = dma.vmem_to_hbm [thread:$0]  (%p2809_p5), %s3520_s29, 256, %s3517_s28, %s3524_s30, %s2749_s19, %s2749_s19, %s2750_s20  }
 0xdbb PF: > { %p2561_p11 = scmp.ge.s32.totalorder %s2740_s15, 2  ;;  %s1624_s24 = sand.u32 1, %s2728_s12  }
 0xdbc   : > { %p3572_p12 = scmp.ne.s32.totalorder %s3569_s23, 0  ;;  %s1625_s25 = scalar_lea.sflag [#allocation5], %s1624_s24 }
 0xdbe   : > { %p2556_p13 = pnand %p2561_p11, %p3572_p12 }
 0xdc0   : > { %p2557_p0 = pneg %p2556_p13 }
 0xdc2   : > { %2723 = dma.done.wait (%p2557_p0), %s1625_s25, 256  }
 0xdc3   : > { %2725 = vsyncadd (%p2557_p0), %s1625_s25, 4294967040  ;;  %p14_p1 = scmp.ge.s32.totalorder %s2796_s18, 5   ;;  %s3573_s12 = smov %s2732_s13 }
 0xdc4   : > { %s3574_s13 = smov %s2736_s14  ;;  %s3575_s14 = smov %s2807_s21 }
 0xdc5   : > { %s3576_s15 = smov %s2796_s18  ;;  %16 = sbr.rel (!%p14_p1) target bundleno = 4 (0x4), region = 81 }
 0xdca   :  { %1630 = vsyncpa [#allocation4], 1 }
 0xdcb   :  { %1632 = vsyncpa [#allocation4 + $0x1], 1 }
 0xdcc   :  { %1633 = vsyncpa [#allocation5], 1 }
 0xdcd   :  { %1635 = vsyncpa [#allocation5 + $0x1], 1 }

</bundles_post_ra>
